<compile_context>
chip_gen: v5e
topology: v5e:2x2
jax: 0.10.0
libtpu: 0.0.40
codegen_flags: <defaults>
</compile_context>

<pallas_src>
import jax
import jax.numpy as jnp
from jax import lax
from jax.experimental import pallas as pl
from jax.experimental.pallas import tpu as pltpu


# ----------------------------- fused forward kernel -------------------------
def _make_fused_kernel(B, N, num_layers, n_in):
    nb = num_layers - 2
    n_stack = 2 * num_layers  # (W, b) per GraphConv layer in a conv stack

    def kernel(*refs):
        in_refs = refs[:n_in]
        xr_ref, adjr_ref, z_ref, zg_ref = refs[n_in:]

        x_ref, adj_ref = in_refs[0], in_refs[1]
        dec_refs = in_refs[2:2 + n_stack]
        enc_refs = in_refs[2 + n_stack:2 + 2 * n_stack]
        pw1_ref, pb1_ref, pw2_ref, pb2_ref = in_refs[2 + 2 * n_stack:]

        x = x_ref[...]                                # (B, N, E)  f32
        adj = adj_ref[...]                            # (B, N, N)  f32
        eye = jnp.eye(N, dtype=jnp.float32)[None]     # (1, N, N)

        def gconv(h, adj_self16, w_ref, b_ref, relu):
            # GraphConv with add_self folded into (adj + I); bf16 MXU, f32 accumulate.
            d_in = h.shape[-1]
            d_out = w_ref.shape[1]
            # aggregation: per-graph (N, N) @ (N, d_in)
            y = jnp.einsum("bij,bjd->bid", adj_self16, h.astype(jnp.bfloat16),
                           preferred_element_type=jnp.float32)
            # weight matmul over all B*N rows at once
            y = jnp.dot(y.reshape(B * N, d_in).astype(jnp.bfloat16),
                        w_ref[...].astype(jnp.bfloat16),
                        preferred_element_type=jnp.float32)
            y = y.reshape(B, N, d_out) + b_ref[...]
            # F.normalize(p=2, dim=2): y / max(||y||, 1e-12), via rsqrt
            ss = jnp.sum(y * y, axis=-1, keepdims=True)
            y = y * lax.rsqrt(jnp.maximum(ss, 1e-24))
            if relu:
                y = jnp.maximum(y, 0.0)
            return y

        def bn(h):
            # training-mode BatchNorm1d(num_features=N) on (B, N, D)
            cnt = float(B) * float(h.shape[-1])
            s = jnp.sum(jnp.sum(h, axis=2, keepdims=True), axis=0, keepdims=True)
            mean = s / cnt
            d = h - mean
            sq = jnp.sum(jnp.sum(d * d, axis=2, keepdims=True), axis=0, keepdims=True)
            var = sq / cnt                            # biased variance
            return d * lax.rsqrt(var + 1e-5)

        def conv_stack(h, adj_self16, prefs):
            # conv_first -> relu -> bn ; (conv_block -> relu -> bn)* ; conv_last
            h = bn(gconv(h, adj_self16, prefs[0], prefs[1], relu=True))
            for i in range(nb):
                h = bn(gconv(h, adj_self16, prefs[2 + 2 * i], prefs[3 + 2 * i], relu=True))
            return gconv(h, adj_self16, prefs[-2], prefs[-1], relu=False)

        # ---- Att_Decoder_: x_ = decoder(x, adj) ----
        adj_self_dec = (adj + eye).astype(jnp.bfloat16)
        x_rec = conv_stack(x, adj_self_dec, dec_refs)           # (B, N, input_dim)
        xr_ref[...] = x_rec

        # ---- Stru_Decoder_: adj_ = sigmoid(x @ x^T) ----
        x16 = x.astype(jnp.bfloat16)
        adj_rec = jax.nn.sigmoid(
            jnp.einsum("bnd,bmd->bnm", x16, x16, preferred_element_type=jnp.float32))
        adjr_ref[...] = adj_rec                                 # (B, N, N)

        # ---- Encoder_: z, z_g = encoder(x_, adj_) ----
        adj_self_enc = (adj_rec + eye).astype(jnp.bfloat16)
        z = conv_stack(x_rec, adj_self_enc, enc_refs)           # (B, N, E)
        z_ref[...] = z

        z_g = jnp.max(z, axis=1)                                # (B, E)
        h = jnp.dot(z_g.astype(jnp.bfloat16), pw1_ref[...].astype(jnp.bfloat16),
                    preferred_element_type=jnp.float32) + pb1_ref[...]
        h = jnp.maximum(h, 0.0)
        zg_ref[...] = jnp.dot(h.astype(jnp.bfloat16), pw2_ref[...].astype(jnp.bfloat16),
                              preferred_element_type=jnp.float32) + pb2_ref[...]

    return kernel


def graph_autoencoder_forward(params, x, adj, num_layers):
    B, N, _ = x.shape
    dec, enc, proj = params["dec"], params["enc"], params["proj"]
    input_dim = dec[-2].shape[1]       # attr_decoder conv_last output dim
    embedding_dim = enc[-2].shape[1]   # encoder conv_last output dim

    inputs = [x, adj] + list(dec) + list(enc) + list(proj)
    n_in = len(inputs)

    def full_spec(arr):
        nd = arr.ndim
        return pl.BlockSpec(arr.shape, lambda i, _nd=nd: (0,) * _nd)

    in_specs = [full_spec(a) for a in inputs]
    out_shape = (
        jax.ShapeDtypeStruct((B, N, input_dim), jnp.float32),       # x_
        jax.ShapeDtypeStruct((B, N, N), jnp.float32),               # adj_
        jax.ShapeDtypeStruct((B, N, embedding_dim), jnp.float32),   # z_tilde
        jax.ShapeDtypeStruct((B, embedding_dim), jnp.float32),      # z_tilde_g
    )
    out_specs = (
        pl.BlockSpec((B, N, input_dim), lambda i: (0, 0, 0)),
        pl.BlockSpec((B, N, N), lambda i: (0, 0, 0)),
        pl.BlockSpec((B, N, embedding_dim), lambda i: (0, 0, 0)),
        pl.BlockSpec((B, embedding_dim), lambda i: (0, 0)),
    )
    kernel = _make_fused_kernel(B, N, num_layers, n_in)
    return pl.pallas_call(
        kernel,
        out_shape=out_shape,
        grid=(1,),
        in_specs=in_specs,
        out_specs=out_specs,
        compiler_params=pltpu.CompilerParams(
            dimension_semantics=("arbitrary",),
            vmem_limit_bytes=32 * 1024 * 1024),
    )(*inputs)


# ------------------------------- parameters ---------------------------------
def _kaiming_uniform(key, d_in, d_out):
    # torch init.kaiming_uniform_(W, mode='fan_in', 'relu') on a (d_in, d_out) tensor:
    # torch's fan_in = W.size(1) = d_out; bound = sqrt(6 / fan_in)
    bound = (6.0 / d_out) ** 0.5
    return jax.random.uniform(key, (d_in, d_out), jnp.float32, -bound, bound)


def _linear_init(key, d_in, d_out):
    # torch.nn.Linear default: U(-1/sqrt(fan_in), 1/sqrt(fan_in)) for W and b
    kw, kb = jax.random.split(key)
    bound = (1.0 / d_in) ** 0.5
    w = jax.random.uniform(kw, (d_in, d_out), jnp.float32, -bound, bound)
    b = jax.random.uniform(kb, (1, d_out), jnp.float32, -bound, bound)
    return w, b


def _graphconv_stack_init(key, d_in, d_hidden, d_out, num_layers):
    keys = jax.random.split(key, num_layers)
    params = [_kaiming_uniform(keys[0], d_in, d_hidden),
              jnp.zeros((1, d_hidden), jnp.float32)]
    for i in range(num_layers - 2):
        params += [_kaiming_uniform(keys[1 + i], d_hidden, d_hidden),
                   jnp.zeros((1, d_hidden), jnp.float32)]
    params += [_kaiming_uniform(keys[num_layers - 1], d_hidden, d_out),
               jnp.zeros((1, d_out), jnp.float32)]
    return params


def init_autoencoder_params(key, input_dim, hidden_dim, embedding_dim, num_layers):
    k_dec, k_enc, k_p1, k_p2 = jax.random.split(key, 4)
    # attr_decoder  = Att_Decoder_(embedding_dim, hidden_dim, input_dim, ...)
    dec = _graphconv_stack_init(k_dec, embedding_dim, hidden_dim, input_dim, num_layers)
    # shared_encoder = Encoder_(input_dim, hidden_dim, embedding_dim, ...)
    enc = _graphconv_stack_init(k_enc, input_dim, hidden_dim, embedding_dim, num_layers)
    pw1, pb1 = _linear_init(k_p1, embedding_dim, embedding_dim)
    pw2, pb2 = _linear_init(k_p2, embedding_dim, embedding_dim)
    return {"dec": dec, "enc": enc, "proj": [pw1, pb1, pw2, pb2]}


# ------------------------- pure-JAX f32 reference ----------------------------
def _reference_forward(params, x, adj, num_layers):
    nb = num_layers - 2

    def gconv(h, a, w, b, relu):
        y = jnp.einsum("bij,bjd->bid", a, h) + h
        y = jnp.einsum("bnd,de->bne", y, w) + b
        n = jnp.sqrt(jnp.sum(y * y, axis=-1, keepdims=True))
        y = y / jnp.maximum(n, 1e-12)
        return jnp.maximum(y, 0.0) if relu else y

    def bn(h):
        m = jnp.mean(h, axis=(0, 2), keepdims=True)
        v = jnp.mean((h - m) ** 2, axis=(0, 2), keepdims=True)
        return (h - m) * lax.rsqrt(v + 1e-5)

    def stack(h, a, ps):
        h = bn(gconv(h, a, ps[0], ps[1], True))
        for i in range(nb):
            h = bn(gconv(h, a, ps[2 + 2 * i], ps[3 + 2 * i], True))
        return gconv(h, a, ps[-2], ps[-1], False)

    x_rec = stack(x, adj, params["dec"])
    adj_rec = jax.nn.sigmoid(jnp.einsum("bnd,bmd->bnm", x, x))
    z = stack(x_rec, adj_rec, params["enc"])
    z_g = jnp.max(z, axis=1)
    pw1, pb1, pw2, pb2 = params["proj"]
    z_g = jnp.maximum(z_g @ pw1 + pb1, 0.0) @ pw2 + pb2
    return x_rec, adj_rec, z, z_g


if __name__ == "__main__":
    B, N = 2, 8
    input_dim, hidden_dim, embedding_dim = 4, 32, 32
    num_layers = 3  # conv_first + 1 conv_block + conv_last

    key = jax.random.PRNGKey(0)
    k_x, k_adj, k_p = jax.random.split(key, 3)

    # GRAPH_AUTOENCODER_.forward feeds x straight into attr_decoder, whose
    # conv_first expects embedding_dim input features.
    x = jax.random.normal(k_x, (B, N, embedding_dim), jnp.float32)
    a = jax.random.uniform(k_adj, (B, N, N), jnp.float32)
    adj = 0.5 * (a + jnp.swapaxes(a, 1, 2))  # symmetric adjacency

    params = init_autoencoder_params(k_p, input_dim, hidden_dim, embedding_dim,
                                     num_layers)

    x_rec, adj_rec, z, z_g = graph_autoencoder_forward(params, x, adj, num_layers)
    jax.block_until_ready((x_rec, adj_rec, z, z_g))

    assert x_rec.shape == (B, N, input_dim)
    assert adj_rec.shape == (B, N, N)
    assert z.shape == (B, N, embedding_dim)
    assert z_g.shape == (B, embedding_dim)
    for t in (x_rec, adj_rec, z, z_g):
        assert bool(jnp.all(jnp.isfinite(t)))

    # Sanity-check against a pure-JAX f32 reference (kernel matmuls use bf16
    # operands with f32 accumulation, hence the loose tolerance).
    xr_r, ar_r, z_r, zg_r = _reference_forward(params, x, adj, num_layers)
    for got, ref in ((x_rec, xr_r), (adj_rec, ar_r), (z, z_r), (z_g, zg_r)):
        assert float(jnp.max(jnp.abs(got - ref))) < 0.15

    print("KERNEL_OK")
</pallas_src>

<mosaic_0001>
module attributes {stable_mosaic.version = 11 : i64} {
  func.func @kernel(%arg0: i32, %arg1: memref<2x8x32xf32, #tpu.memory_space<vmem>>, %arg2: memref<2x8x8xf32, #tpu.memory_space<vmem>>, %arg3: memref<32x32xf32, #tpu.memory_space<vmem>>, %arg4: memref<1x32xf32, #tpu.memory_space<vmem>>, %arg5: memref<32x32xf32, #tpu.memory_space<vmem>>, %arg6: memref<1x32xf32, #tpu.memory_space<vmem>>, %arg7: memref<32x4xf32, #tpu.memory_space<vmem>>, %arg8: memref<1x4xf32, #tpu.memory_space<vmem>>, %arg9: memref<4x32xf32, #tpu.memory_space<vmem>>, %arg10: memref<1x32xf32, #tpu.memory_space<vmem>>, %arg11: memref<32x32xf32, #tpu.memory_space<vmem>>, %arg12: memref<1x32xf32, #tpu.memory_space<vmem>>, %arg13: memref<32x32xf32, #tpu.memory_space<vmem>>, %arg14: memref<1x32xf32, #tpu.memory_space<vmem>>, %arg15: memref<32x32xf32, #tpu.memory_space<vmem>>, %arg16: memref<1x32xf32, #tpu.memory_space<vmem>>, %arg17: memref<32x32xf32, #tpu.memory_space<vmem>>, %arg18: memref<1x32xf32, #tpu.memory_space<vmem>>, %arg19: memref<2x8x4xf32, #tpu.memory_space<vmem>>, %arg20: memref<2x8x8xf32, #tpu.memory_space<vmem>>, %arg21: memref<2x8x32xf32, #tpu.memory_space<vmem>>, %arg22: memref<2x32xf32, #tpu.memory_space<vmem>>) attributes {dimension_semantics = [#tpu.dimension_semantics<arbitrary>], iteration_bounds = array<i64: 1>, scalar_prefetch = 0 : i64, scratch_operands = 0 : i64, tpu.core_type = #tpu.core_type<tc>, window_params = [{pipeline_mode = #tpu.pipeline_mode<synchronous>, transform_indices = @transform_0, window_bounds = array<i64: 2, 8, 32>}, {pipeline_mode = #tpu.pipeline_mode<synchronous>, transform_indices = @transform_1, window_bounds = array<i64: 2, 8, 8>}, {pipeline_mode = #tpu.pipeline_mode<synchronous>, transform_indices = @transform_2, window_bounds = array<i64: 32, 32>}, {pipeline_mode = #tpu.pipeline_mode<synchronous>, transform_indices = @transform_3, window_bounds = array<i64: 1, 32>}, {pipeline_mode = #tpu.pipeline_mode<synchronous>, transform_indices = @transform_4, window_bounds = array<i64: 32, 32>}, {pipeline_mode = #tpu.pipeline_mode<synchronous>, transform_indices = @transform_5, window_bounds = array<i64: 1, 32>}, {pipeline_mode = #tpu.pipeline_mode<synchronous>, transform_indices = @transform_6, window_bounds = array<i64: 32, 4>}, {pipeline_mode = #tpu.pipeline_mode<synchronous>, transform_indices = @transform_7, window_bounds = array<i64: 1, 4>}, {pipeline_mode = #tpu.pipeline_mode<synchronous>, transform_indices = @transform_8, window_bounds = array<i64: 4, 32>}, {pipeline_mode = #tpu.pipeline_mode<synchronous>, transform_indices = @transform_9, window_bounds = array<i64: 1, 32>}, {pipeline_mode = #tpu.pipeline_mode<synchronous>, transform_indices = @transform_10, window_bounds = array<i64: 32, 32>}, {pipeline_mode = #tpu.pipeline_mode<synchronous>, transform_indices = @transform_11, window_bounds = array<i64: 1, 32>}, {pipeline_mode = #tpu.pipeline_mode<synchronous>, transform_indices = @transform_12, window_bounds = array<i64: 32, 32>}, {pipeline_mode = #tpu.pipeline_mode<synchronous>, transform_indices = @transform_13, window_bounds = array<i64: 1, 32>}, {pipeline_mode = #tpu.pipeline_mode<synchronous>, transform_indices = @transform_14, window_bounds = array<i64: 32, 32>}, {pipeline_mode = #tpu.pipeline_mode<synchronous>, transform_indices = @transform_15, window_bounds = array<i64: 1, 32>}, {pipeline_mode = #tpu.pipeline_mode<synchronous>, transform_indices = @transform_16, window_bounds = array<i64: 32, 32>}, {pipeline_mode = #tpu.pipeline_mode<synchronous>, transform_indices = @transform_17, window_bounds = array<i64: 1, 32>}, {pipeline_mode = #tpu.pipeline_mode<synchronous>, transform_indices = @transform_18, window_bounds = array<i64: 2, 8, 4>}, {pipeline_mode = #tpu.pipeline_mode<synchronous>, transform_indices = @transform_19, window_bounds = array<i64: 2, 8, 8>}, {pipeline_mode = #tpu.pipeline_mode<synchronous>, transform_indices = @transform_20, window_bounds = array<i64: 2, 8, 32>}, {pipeline_mode = #tpu.pipeline_mode<synchronous>, transform_indices = @transform_21, window_bounds = array<i64: 2, 32>}]} {
    %c0 = arith.constant 0 : index
    %c0_0 = arith.constant 0 : index
    %c0_1 = arith.constant 0 : index
    %0 = vector.load %arg1[%c0, %c0_0, %c0_1] : memref<2x8x32xf32, #tpu.memory_space<vmem>>, vector<2x8x32xf32>
    %c0_2 = arith.constant 0 : index
    %c0_3 = arith.constant 0 : index
    %c0_4 = arith.constant 0 : index
    %1 = vector.load %arg2[%c0_2, %c0_3, %c0_4] : memref<2x8x8xf32, #tpu.memory_space<vmem>>, vector<2x8x8xf32>
    %2 = tpu.iota {dimensions = array<i32: 0>} : vector<8x8xi32>
    %3 = tpu.iota {dimensions = array<i32: 1>} : vector<8x8xi32>
    %c0_i32 = arith.constant 0 : i32
    %4 = vector.broadcast %c0_i32 : i32 to vector<8x8xi32>
    %5 = arith.addi %2, %4 : vector<8x8xi32>
    %6 = arith.cmpi eq, %5, %3 : vector<8x8xi32>
    %7 = arith.extui %6 : vector<8x8xi1> to vector<8x8xi32>
    %8 = arith.sitofp %7 : vector<8x8xi32> to vector<8x8xf32>
    %9 = vector.shape_cast %8 : vector<8x8xf32> to vector<1x8x8xf32>
    %10 = vector.broadcast %9 : vector<1x8x8xf32> to vector<2x8x8xf32>
    %11 = arith.addf %1, %10 : vector<2x8x8xf32>
    %12 = arith.truncf %11 : vector<2x8x8xf32> to vector<2x8x8xbf16>
    %13 = arith.truncf %0 : vector<2x8x32xf32> to vector<2x8x32xbf16>
    "tpu.trace_start"() <{level = 10 : i32, message = "bij,bjd->bid"}> : () -> ()
    %cst = arith.constant dense<0.000000e+00> : vector<2x8x32xf32>
    %14 = tpu.matmul %12, %13, %cst {dimension_numbers = #tpu.dot_dimension_numbers<[2], [1], [1], [2], [0, 0, 0, 1, 1, 2], [0], [0]>} : vector<2x8x8xbf16>, vector<2x8x32xbf16>, vector<2x8x32xf32> -> vector<2x8x32xf32>
    "tpu.trace_stop"() : () -> ()
    %15 = vector.shape_cast %14 : vector<2x8x32xf32> to vector<16x32xf32>
    %16 = arith.truncf %15 : vector<16x32xf32> to vector<16x32xbf16>
    %c0_5 = arith.constant 0 : index
    %c0_6 = arith.constant 0 : index
    %17 = vector.load %arg3[%c0_5, %c0_6] : memref<32x32xf32, #tpu.memory_space<vmem>>, vector<32x32xf32>
    %18 = arith.truncf %17 : vector<32x32xf32> to vector<32x32xbf16>
    %cst_7 = arith.constant dense<0.000000e+00> : vector<16x32xf32>
    %19 = tpu.matmul %16, %18, %cst_7 {dimension_numbers = #tpu.dot_dimension_numbers<[1], [0], [0], [1], [0, 0, 1, 1], [], []>} : vector<16x32xbf16>, vector<32x32xbf16>, vector<16x32xf32> -> vector<16x32xf32>
    %20 = vector.shape_cast %19 : vector<16x32xf32> to vector<2x8x32xf32>
    %c0_8 = arith.constant 0 : index
    %c0_9 = arith.constant 0 : index
    %21 = vector.load %arg4[%c0_8, %c0_9] : memref<1x32xf32, #tpu.memory_space<vmem>>, vector<1x32xf32>
    %22 = vector.shape_cast %21 : vector<1x32xf32> to vector<1x1x32xf32>
    %23 = vector.broadcast %22 : vector<1x1x32xf32> to vector<2x8x32xf32>
    %24 = arith.addf %20, %23 : vector<2x8x32xf32>
    %25 = arith.mulf %24, %24 : vector<2x8x32xf32>
    %cst_10 = arith.constant dense<0.000000e+00> : vector<2x8xf32>
    %26 = vector.multi_reduction <add>, %25, %cst_10 [2] : vector<2x8x32xf32> to vector<2x8xf32>
    %27 = vector.shape_cast %26 : vector<2x8xf32> to vector<2x8x1xf32>
    %cst_11 = arith.constant 1.000000e-24 : f32
    %28 = vector.broadcast %cst_11 : f32 to vector<2x8x1xf32>
    %29 = arith.maximumf %27, %28 : vector<2x8x1xf32>
    %30 = math.rsqrt %29 : vector<2x8x1xf32>
    %31 = vector.broadcast %30 : vector<2x8x1xf32> to vector<2x8x32xf32>
    %32 = arith.mulf %24, %31 : vector<2x8x32xf32>
    %cst_12 = arith.constant 0.000000e+00 : f32
    %33 = vector.broadcast %cst_12 : f32 to vector<2x8x32xf32>
    %34 = arith.maximumf %32, %33 : vector<2x8x32xf32>
    %cst_13 = arith.constant dense<0.000000e+00> : vector<2x8xf32>
    %35 = vector.multi_reduction <add>, %34, %cst_13 [2] : vector<2x8x32xf32> to vector<2x8xf32>
    %36 = vector.shape_cast %35 : vector<2x8xf32> to vector<2x8x1xf32>
    %cst_14 = arith.constant dense<0.000000e+00> : vector<8x1xf32>
    %37 = vector.multi_reduction <add>, %36, %cst_14 [0] : vector<2x8x1xf32> to vector<8x1xf32>
    %38 = vector.shape_cast %37 : vector<8x1xf32> to vector<1x8x1xf32>
    %cst_15 = arith.constant 6.400000e+01 : f32
    %39 = vector.broadcast %cst_15 : f32 to vector<1x8x1xf32>
    %40 = arith.divf %38, %39 : vector<1x8x1xf32>
    %41 = vector.broadcast %40 : vector<1x8x1xf32> to vector<2x8x32xf32>
    %42 = arith.subf %34, %41 : vector<2x8x32xf32>
    %43 = arith.mulf %42, %42 : vector<2x8x32xf32>
    %cst_16 = arith.constant dense<0.000000e+00> : vector<2x8xf32>
    %44 = vector.multi_reduction <add>, %43, %cst_16 [2] : vector<2x8x32xf32> to vector<2x8xf32>
    %45 = vector.shape_cast %44 : vector<2x8xf32> to vector<2x8x1xf32>
    %cst_17 = arith.constant dense<0.000000e+00> : vector<8x1xf32>
    %46 = vector.multi_reduction <add>, %45, %cst_17 [0] : vector<2x8x1xf32> to vector<8x1xf32>
    %47 = vector.shape_cast %46 : vector<8x1xf32> to vector<1x8x1xf32>
    %cst_18 = arith.constant 6.400000e+01 : f32
    %48 = vector.broadcast %cst_18 : f32 to vector<1x8x1xf32>
    %49 = arith.divf %47, %48 : vector<1x8x1xf32>
    %cst_19 = arith.constant 9.99999974E-6 : f32
    %50 = vector.broadcast %cst_19 : f32 to vector<1x8x1xf32>
    %51 = arith.addf %49, %50 : vector<1x8x1xf32>
    %52 = math.rsqrt %51 : vector<1x8x1xf32>
    %53 = vector.broadcast %52 : vector<1x8x1xf32> to vector<2x8x32xf32>
    %54 = arith.mulf %42, %53 : vector<2x8x32xf32>
    %55 = arith.truncf %54 : vector<2x8x32xf32> to vector<2x8x32xbf16>
    "tpu.trace_start"() <{level = 10 : i32, message = "bij,bjd->bid"}> : () -> ()
    %cst_20 = arith.constant dense<0.000000e+00> : vector<2x8x32xf32>
    %56 = tpu.matmul %12, %55, %cst_20 {dimension_numbers = #tpu.dot_dimension_numbers<[2], [1], [1], [2], [0, 0, 0, 1, 1, 2], [0], [0]>} : vector<2x8x8xbf16>, vector<2x8x32xbf16>, vector<2x8x32xf32> -> vector<2x8x32xf32>
    "tpu.trace_stop"() : () -> ()
    %57 = vector.shape_cast %56 : vector<2x8x32xf32> to vector<16x32xf32>
    %58 = arith.truncf %57 : vector<16x32xf32> to vector<16x32xbf16>
    %c0_21 = arith.constant 0 : index
    %c0_22 = arith.constant 0 : index
    %59 = vector.load %arg5[%c0_21, %c0_22] : memref<32x32xf32, #tpu.memory_space<vmem>>, vector<32x32xf32>
    %60 = arith.truncf %59 : vector<32x32xf32> to vector<32x32xbf16>
    %cst_23 = arith.constant dense<0.000000e+00> : vector<16x32xf32>
    %61 = tpu.matmul %58, %60, %cst_23 {dimension_numbers = #tpu.dot_dimension_numbers<[1], [0], [0], [1], [0, 0, 1, 1], [], []>} : vector<16x32xbf16>, vector<32x32xbf16>, vector<16x32xf32> -> vector<16x32xf32>
    %62 = vector.shape_cast %61 : vector<16x32xf32> to vector<2x8x32xf32>
    %c0_24 = arith.constant 0 : index
    %c0_25 = arith.constant 0 : index
    %63 = vector.load %arg6[%c0_24, %c0_25] : memref<1x32xf32, #tpu.memory_space<vmem>>, vector<1x32xf32>
    %64 = vector.shape_cast %63 : vector<1x32xf32> to vector<1x1x32xf32>
    %65 = vector.broadcast %64 : vector<1x1x32xf32> to vector<2x8x32xf32>
    %66 = arith.addf %62, %65 : vector<2x8x32xf32>
    %67 = arith.mulf %66, %66 : vector<2x8x32xf32>
    %cst_26 = arith.constant dense<0.000000e+00> : vector<2x8xf32>
    %68 = vector.multi_reduction <add>, %67, %cst_26 [2] : vector<2x8x32xf32> to vector<2x8xf32>
    %69 = vector.shape_cast %68 : vector<2x8xf32> to vector<2x8x1xf32>
    %cst_27 = arith.constant 1.000000e-24 : f32
    %70 = vector.broadcast %cst_27 : f32 to vector<2x8x1xf32>
    %71 = arith.maximumf %69, %70 : vector<2x8x1xf32>
    %72 = math.rsqrt %71 : vector<2x8x1xf32>
    %73 = vector.broadcast %72 : vector<2x8x1xf32> to vector<2x8x32xf32>
    %74 = arith.mulf %66, %73 : vector<2x8x32xf32>
    %cst_28 = arith.constant 0.000000e+00 : f32
    %75 = vector.broadcast %cst_28 : f32 to vector<2x8x32xf32>
    %76 = arith.maximumf %74, %75 : vector<2x8x32xf32>
    %cst_29 = arith.constant dense<0.000000e+00> : vector<2x8xf32>
    %77 = vector.multi_reduction <add>, %76, %cst_29 [2] : vector<2x8x32xf32> to vector<2x8xf32>
    %78 = vector.shape_cast %77 : vector<2x8xf32> to vector<2x8x1xf32>
    %cst_30 = arith.constant dense<0.000000e+00> : vector<8x1xf32>
    %79 = vector.multi_reduction <add>, %78, %cst_30 [0] : vector<2x8x1xf32> to vector<8x1xf32>
    %80 = vector.shape_cast %79 : vector<8x1xf32> to vector<1x8x1xf32>
    %cst_31 = arith.constant 6.400000e+01 : f32
    %81 = vector.broadcast %cst_31 : f32 to vector<1x8x1xf32>
    %82 = arith.divf %80, %81 : vector<1x8x1xf32>
    %83 = vector.broadcast %82 : vector<1x8x1xf32> to vector<2x8x32xf32>
    %84 = arith.subf %76, %83 : vector<2x8x32xf32>
    %85 = arith.mulf %84, %84 : vector<2x8x32xf32>
    %cst_32 = arith.constant dense<0.000000e+00> : vector<2x8xf32>
    %86 = vector.multi_reduction <add>, %85, %cst_32 [2] : vector<2x8x32xf32> to vector<2x8xf32>
    %87 = vector.shape_cast %86 : vector<2x8xf32> to vector<2x8x1xf32>
    %cst_33 = arith.constant dense<0.000000e+00> : vector<8x1xf32>
    %88 = vector.multi_reduction <add>, %87, %cst_33 [0] : vector<2x8x1xf32> to vector<8x1xf32>
    %89 = vector.shape_cast %88 : vector<8x1xf32> to vector<1x8x1xf32>
    %cst_34 = arith.constant 6.400000e+01 : f32
    %90 = vector.broadcast %cst_34 : f32 to vector<1x8x1xf32>
    %91 = arith.divf %89, %90 : vector<1x8x1xf32>
    %cst_35 = arith.constant 9.99999974E-6 : f32
    %92 = vector.broadcast %cst_35 : f32 to vector<1x8x1xf32>
    %93 = arith.addf %91, %92 : vector<1x8x1xf32>
    %94 = math.rsqrt %93 : vector<1x8x1xf32>
    %95 = vector.broadcast %94 : vector<1x8x1xf32> to vector<2x8x32xf32>
    %96 = arith.mulf %84, %95 : vector<2x8x32xf32>
    %97 = arith.truncf %96 : vector<2x8x32xf32> to vector<2x8x32xbf16>
    "tpu.trace_start"() <{level = 10 : i32, message = "bij,bjd->bid"}> : () -> ()
    %cst_36 = arith.constant dense<0.000000e+00> : vector<2x8x32xf32>
    %98 = tpu.matmul %12, %97, %cst_36 {dimension_numbers = #tpu.dot_dimension_numbers<[2], [1], [1], [2], [0, 0, 0, 1, 1, 2], [0], [0]>} : vector<2x8x8xbf16>, vector<2x8x32xbf16>, vector<2x8x32xf32> -> vector<2x8x32xf32>
    "tpu.trace_stop"() : () -> ()
    %99 = vector.shape_cast %98 : vector<2x8x32xf32> to vector<16x32xf32>
    %100 = arith.truncf %99 : vector<16x32xf32> to vector<16x32xbf16>
    %c0_37 = arith.constant 0 : index
    %c0_38 = arith.constant 0 : index
    %101 = vector.load %arg7[%c0_37, %c0_38] : memref<32x4xf32, #tpu.memory_space<vmem>>, vector<32x4xf32>
    %102 = arith.truncf %101 : vector<32x4xf32> to vector<32x4xbf16>
    %cst_39 = arith.constant dense<0.000000e+00> : vector<16x4xf32>
    %103 = tpu.matmul %100, %102, %cst_39 {dimension_numbers = #tpu.dot_dimension_numbers<[1], [0], [0], [1], [0, 0, 1, 1], [], []>} : vector<16x32xbf16>, vector<32x4xbf16>, vector<16x4xf32> -> vector<16x4xf32>
    %104 = vector.shape_cast %103 : vector<16x4xf32> to vector<2x8x4xf32>
    %c0_40 = arith.constant 0 : index
    %c0_41 = arith.constant 0 : index
    %105 = vector.load %arg8[%c0_40, %c0_41] : memref<1x4xf32, #tpu.memory_space<vmem>>, vector<1x4xf32>
    %106 = vector.shape_cast %105 : vector<1x4xf32> to vector<1x1x4xf32>
    %107 = vector.broadcast %106 : vector<1x1x4xf32> to vector<2x8x4xf32>
    %108 = arith.addf %104, %107 : vector<2x8x4xf32>
    %109 = arith.mulf %108, %108 : vector<2x8x4xf32>
    %cst_42 = arith.constant dense<0.000000e+00> : vector<2x8xf32>
    %110 = vector.multi_reduction <add>, %109, %cst_42 [2] : vector<2x8x4xf32> to vector<2x8xf32>
    %111 = vector.shape_cast %110 : vector<2x8xf32> to vector<2x8x1xf32>
    %cst_43 = arith.constant 1.000000e-24 : f32
    %112 = vector.broadcast %cst_43 : f32 to vector<2x8x1xf32>
    %113 = arith.maximumf %111, %112 : vector<2x8x1xf32>
    %114 = math.rsqrt %113 : vector<2x8x1xf32>
    %115 = vector.broadcast %114 : vector<2x8x1xf32> to vector<2x8x4xf32>
    %116 = arith.mulf %108, %115 : vector<2x8x4xf32>
    %c0_44 = arith.constant 0 : index
    %c0_45 = arith.constant 0 : index
    %c0_46 = arith.constant 0 : index
    %117 = vector.load %arg19[%c0_44, %c0_45, %c0_46] : memref<2x8x4xf32, #tpu.memory_space<vmem>>, vector<2x8x4xf32>
    tpu.vector_store %arg19[%c0_44, %c0_45, %c0_46], %116 {strides = array<i32>} : memref<2x8x4xf32, #tpu.memory_space<vmem>>, vector<2x8x4xf32>,
    %118 = arith.truncf %0 : vector<2x8x32xf32> to vector<2x8x32xbf16>
    "tpu.trace_start"() <{level = 10 : i32, message = "bnd,bmd->bnm"}> : () -> ()
    %cst_47 = arith.constant dense<0.000000e+00> : vector<2x8x8xf32>
    %119 = tpu.matmul %118, %118, %cst_47 {dimension_numbers = #tpu.dot_dimension_numbers<[2], [2], [1], [1], [0, 0, 0, 1, 1, 1], [0], [0]>} : vector<2x8x32xbf16>, vector<2x8x32xbf16>, vector<2x8x8xf32> -> vector<2x8x8xf32>
    "tpu.trace_stop"() : () -> ()
    %120 = arith.negf %119 : vector<2x8x8xf32>
    %121 = math.exp %120 : vector<2x8x8xf32>
    %cst_48 = arith.constant 1.000000e+00 : f32
    %122 = vector.broadcast %cst_48 : f32 to vector<2x8x8xf32>
    %123 = arith.addf %122, %121 : vector<2x8x8xf32>
    %124 = arith.divf %122, %123 : vector<2x8x8xf32>
    %c0_49 = arith.constant 0 : index
    %c0_50 = arith.constant 0 : index
    %c0_51 = arith.constant 0 : index
    %125 = vector.load %arg20[%c0_49, %c0_50, %c0_51] : memref<2x8x8xf32, #tpu.memory_space<vmem>>, vector<2x8x8xf32>
    tpu.vector_store %arg20[%c0_49, %c0_50, %c0_51], %124 {strides = array<i32>} : memref<2x8x8xf32, #tpu.memory_space<vmem>>, vector<2x8x8xf32>,
    %126 = vector.broadcast %9 : vector<1x8x8xf32> to vector<2x8x8xf32>
    %127 = arith.addf %124, %126 : vector<2x8x8xf32>
    %128 = arith.truncf %127 : vector<2x8x8xf32> to vector<2x8x8xbf16>
    %129 = arith.truncf %116 : vector<2x8x4xf32> to vector<2x8x4xbf16>
    "tpu.trace_start"() <{level = 10 : i32, message = "bij,bjd->bid"}> : () -> ()
    %cst_52 = arith.constant dense<0.000000e+00> : vector<2x8x4xf32>
    %130 = tpu.matmul %128, %129, %cst_52 {dimension_numbers = #tpu.dot_dimension_numbers<[2], [1], [1], [2], [0, 0, 0, 1, 1, 2], [0], [0]>} : vector<2x8x8xbf16>, vector<2x8x4xbf16>, vector<2x8x4xf32> -> vector<2x8x4xf32>
    "tpu.trace_stop"() : () -> ()
    %131 = vector.shape_cast %130 : vector<2x8x4xf32> to vector<16x4xf32>
    %132 = arith.truncf %131 : vector<16x4xf32> to vector<16x4xbf16>
    %c0_53 = arith.constant 0 : index
    %c0_54 = arith.constant 0 : index
    %133 = vector.load %arg9[%c0_53, %c0_54] : memref<4x32xf32, #tpu.memory_space<vmem>>, vector<4x32xf32>
    %134 = arith.truncf %133 : vector<4x32xf32> to vector<4x32xbf16>
    %cst_55 = arith.constant dense<0.000000e+00> : vector<16x32xf32>
    %135 = tpu.matmul %132, %134, %cst_55 {dimension_numbers = #tpu.dot_dimension_numbers<[1], [0], [0], [1], [0, 0, 1, 1], [], []>} : vector<16x4xbf16>, vector<4x32xbf16>, vector<16x32xf32> -> vector<16x32xf32>
    %136 = vector.shape_cast %135 : vector<16x32xf32> to vector<2x8x32xf32>
    %c0_56 = arith.constant 0 : index
    %c0_57 = arith.constant 0 : index
    %137 = vector.load %arg10[%c0_56, %c0_57] : memref<1x32xf32, #tpu.memory_space<vmem>>, vector<1x32xf32>
    %138 = vector.shape_cast %137 : vector<1x32xf32> to vector<1x1x32xf32>
    %139 = vector.broadcast %138 : vector<1x1x32xf32> to vector<2x8x32xf32>
    %140 = arith.addf %136, %139 : vector<2x8x32xf32>
    %141 = arith.mulf %140, %140 : vector<2x8x32xf32>
    %cst_58 = arith.constant dense<0.000000e+00> : vector<2x8xf32>
    %142 = vector.multi_reduction <add>, %141, %cst_58 [2] : vector<2x8x32xf32> to vector<2x8xf32>
    %143 = vector.shape_cast %142 : vector<2x8xf32> to vector<2x8x1xf32>
    %cst_59 = arith.constant 1.000000e-24 : f32
    %144 = vector.broadcast %cst_59 : f32 to vector<2x8x1xf32>
    %145 = arith.maximumf %143, %144 : vector<2x8x1xf32>
    %146 = math.rsqrt %145 : vector<2x8x1xf32>
    %147 = vector.broadcast %146 : vector<2x8x1xf32> to vector<2x8x32xf32>
    %148 = arith.mulf %140, %147 : vector<2x8x32xf32>
    %cst_60 = arith.constant 0.000000e+00 : f32
    %149 = vector.broadcast %cst_60 : f32 to vector<2x8x32xf32>
    %150 = arith.maximumf %148, %149 : vector<2x8x32xf32>
    %cst_61 = arith.constant dense<0.000000e+00> : vector<2x8xf32>
    %151 = vector.multi_reduction <add>, %150, %cst_61 [2] : vector<2x8x32xf32> to vector<2x8xf32>
    %152 = vector.shape_cast %151 : vector<2x8xf32> to vector<2x8x1xf32>
    %cst_62 = arith.constant dense<0.000000e+00> : vector<8x1xf32>
    %153 = vector.multi_reduction <add>, %152, %cst_62 [0] : vector<2x8x1xf32> to vector<8x1xf32>
    %154 = vector.shape_cast %153 : vector<8x1xf32> to vector<1x8x1xf32>
    %cst_63 = arith.constant 6.400000e+01 : f32
    %155 = vector.broadcast %cst_63 : f32 to vector<1x8x1xf32>
    %156 = arith.divf %154, %155 : vector<1x8x1xf32>
    %157 = vector.broadcast %156 : vector<1x8x1xf32> to vector<2x8x32xf32>
    %158 = arith.subf %150, %157 : vector<2x8x32xf32>
    %159 = arith.mulf %158, %158 : vector<2x8x32xf32>
    %cst_64 = arith.constant dense<0.000000e+00> : vector<2x8xf32>
    %160 = vector.multi_reduction <add>, %159, %cst_64 [2] : vector<2x8x32xf32> to vector<2x8xf32>
    %161 = vector.shape_cast %160 : vector<2x8xf32> to vector<2x8x1xf32>
    %cst_65 = arith.constant dense<0.000000e+00> : vector<8x1xf32>
    %162 = vector.multi_reduction <add>, %161, %cst_65 [0] : vector<2x8x1xf32> to vector<8x1xf32>
    %163 = vector.shape_cast %162 : vector<8x1xf32> to vector<1x8x1xf32>
    %cst_66 = arith.constant 6.400000e+01 : f32
    %164 = vector.broadcast %cst_66 : f32 to vector<1x8x1xf32>
    %165 = arith.divf %163, %164 : vector<1x8x1xf32>
    %cst_67 = arith.constant 9.99999974E-6 : f32
    %166 = vector.broadcast %cst_67 : f32 to vector<1x8x1xf32>
    %167 = arith.addf %165, %166 : vector<1x8x1xf32>
    %168 = math.rsqrt %167 : vector<1x8x1xf32>
    %169 = vector.broadcast %168 : vector<1x8x1xf32> to vector<2x8x32xf32>
    %170 = arith.mulf %158, %169 : vector<2x8x32xf32>
    %171 = arith.truncf %170 : vector<2x8x32xf32> to vector<2x8x32xbf16>
    "tpu.trace_start"() <{level = 10 : i32, message = "bij,bjd->bid"}> : () -> ()
    %cst_68 = arith.constant dense<0.000000e+00> : vector<2x8x32xf32>
    %172 = tpu.matmul %128, %171, %cst_68 {dimension_numbers = #tpu.dot_dimension_numbers<[2], [1], [1], [2], [0, 0, 0, 1, 1, 2], [0], [0]>} : vector<2x8x8xbf16>, vector<2x8x32xbf16>, vector<2x8x32xf32> -> vector<2x8x32xf32>
    "tpu.trace_stop"() : () -> ()
    %173 = vector.shape_cast %172 : vector<2x8x32xf32> to vector<16x32xf32>
    %174 = arith.truncf %173 : vector<16x32xf32> to vector<16x32xbf16>
    %c0_69 = arith.constant 0 : index
    %c0_70 = arith.constant 0 : index
    %175 = vector.load %arg11[%c0_69, %c0_70] : memref<32x32xf32, #tpu.memory_space<vmem>>, vector<32x32xf32>
    %176 = arith.truncf %175 : vector<32x32xf32> to vector<32x32xbf16>
    %cst_71 = arith.constant dense<0.000000e+00> : vector<16x32xf32>
    %177 = tpu.matmul %174, %176, %cst_71 {dimension_numbers = #tpu.dot_dimension_numbers<[1], [0], [0], [1], [0, 0, 1, 1], [], []>} : vector<16x32xbf16>, vector<32x32xbf16>, vector<16x32xf32> -> vector<16x32xf32>
    %178 = vector.shape_cast %177 : vector<16x32xf32> to vector<2x8x32xf32>
    %c0_72 = arith.constant 0 : index
    %c0_73 = arith.constant 0 : index
    %179 = vector.load %arg12[%c0_72, %c0_73] : memref<1x32xf32, #tpu.memory_space<vmem>>, vector<1x32xf32>
    %180 = vector.shape_cast %179 : vector<1x32xf32> to vector<1x1x32xf32>
    %181 = vector.broadcast %180 : vector<1x1x32xf32> to vector<2x8x32xf32>
    %182 = arith.addf %178, %181 : vector<2x8x32xf32>
    %183 = arith.mulf %182, %182 : vector<2x8x32xf32>
    %cst_74 = arith.constant dense<0.000000e+00> : vector<2x8xf32>
    %184 = vector.multi_reduction <add>, %183, %cst_74 [2] : vector<2x8x32xf32> to vector<2x8xf32>
    %185 = vector.shape_cast %184 : vector<2x8xf32> to vector<2x8x1xf32>
    %cst_75 = arith.constant 1.000000e-24 : f32
    %186 = vector.broadcast %cst_75 : f32 to vector<2x8x1xf32>
    %187 = arith.maximumf %185, %186 : vector<2x8x1xf32>
    %188 = math.rsqrt %187 : vector<2x8x1xf32>
    %189 = vector.broadcast %188 : vector<2x8x1xf32> to vector<2x8x32xf32>
    %190 = arith.mulf %182, %189 : vector<2x8x32xf32>
    %cst_76 = arith.constant 0.000000e+00 : f32
    %191 = vector.broadcast %cst_76 : f32 to vector<2x8x32xf32>
    %192 = arith.maximumf %190, %191 : vector<2x8x32xf32>
    %cst_77 = arith.constant dense<0.000000e+00> : vector<2x8xf32>
    %193 = vector.multi_reduction <add>, %192, %cst_77 [2] : vector<2x8x32xf32> to vector<2x8xf32>
    %194 = vector.shape_cast %193 : vector<2x8xf32> to vector<2x8x1xf32>
    %cst_78 = arith.constant dense<0.000000e+00> : vector<8x1xf32>
    %195 = vector.multi_reduction <add>, %194, %cst_78 [0] : vector<2x8x1xf32> to vector<8x1xf32>
    %196 = vector.shape_cast %195 : vector<8x1xf32> to vector<1x8x1xf32>
    %cst_79 = arith.constant 6.400000e+01 : f32
    %197 = vector.broadcast %cst_79 : f32 to vector<1x8x1xf32>
    %198 = arith.divf %196, %197 : vector<1x8x1xf32>
    %199 = vector.broadcast %198 : vector<1x8x1xf32> to vector<2x8x32xf32>
    %200 = arith.subf %192, %199 : vector<2x8x32xf32>
    %201 = arith.mulf %200, %200 : vector<2x8x32xf32>
    %cst_80 = arith.constant dense<0.000000e+00> : vector<2x8xf32>
    %202 = vector.multi_reduction <add>, %201, %cst_80 [2] : vector<2x8x32xf32> to vector<2x8xf32>
    %203 = vector.shape_cast %202 : vector<2x8xf32> to vector<2x8x1xf32>
    %cst_81 = arith.constant dense<0.000000e+00> : vector<8x1xf32>
    %204 = vector.multi_reduction <add>, %203, %cst_81 [0] : vector<2x8x1xf32> to vector<8x1xf32>
    %205 = vector.shape_cast %204 : vector<8x1xf32> to vector<1x8x1xf32>
    %cst_82 = arith.constant 6.400000e+01 : f32
    %206 = vector.broadcast %cst_82 : f32 to vector<1x8x1xf32>
    %207 = arith.divf %205, %206 : vector<1x8x1xf32>
    %cst_83 = arith.constant 9.99999974E-6 : f32
    %208 = vector.broadcast %cst_83 : f32 to vector<1x8x1xf32>
    %209 = arith.addf %207, %208 : vector<1x8x1xf32>
    %210 = math.rsqrt %209 : vector<1x8x1xf32>
    %211 = vector.broadcast %210 : vector<1x8x1xf32> to vector<2x8x32xf32>
    %212 = arith.mulf %200, %211 : vector<2x8x32xf32>
    %213 = arith.truncf %212 : vector<2x8x32xf32> to vector<2x8x32xbf16>
    "tpu.trace_start"() <{level = 10 : i32, message = "bij,bjd->bid"}> : () -> ()
    %cst_84 = arith.constant dense<0.000000e+00> : vector<2x8x32xf32>
    %214 = tpu.matmul %128, %213, %cst_84 {dimension_numbers = #tpu.dot_dimension_numbers<[2], [1], [1], [2], [0, 0, 0, 1, 1, 2], [0], [0]>} : vector<2x8x8xbf16>, vector<2x8x32xbf16>, vector<2x8x32xf32> -> vector<2x8x32xf32>
    "tpu.trace_stop"() : () -> ()
    %215 = vector.shape_cast %214 : vector<2x8x32xf32> to vector<16x32xf32>
    %216 = arith.truncf %215 : vector<16x32xf32> to vector<16x32xbf16>
    %c0_85 = arith.constant 0 : index
    %c0_86 = arith.constant 0 : index
    %217 = vector.load %arg13[%c0_85, %c0_86] : memref<32x32xf32, #tpu.memory_space<vmem>>, vector<32x32xf32>
    %218 = arith.truncf %217 : vector<32x32xf32> to vector<32x32xbf16>
    %cst_87 = arith.constant dense<0.000000e+00> : vector<16x32xf32>
    %219 = tpu.matmul %216, %218, %cst_87 {dimension_numbers = #tpu.dot_dimension_numbers<[1], [0], [0], [1], [0, 0, 1, 1], [], []>} : vector<16x32xbf16>, vector<32x32xbf16>, vector<16x32xf32> -> vector<16x32xf32>
    %220 = vector.shape_cast %219 : vector<16x32xf32> to vector<2x8x32xf32>
    %c0_88 = arith.constant 0 : index
    %c0_89 = arith.constant 0 : index
    %221 = vector.load %arg14[%c0_88, %c0_89] : memref<1x32xf32, #tpu.memory_space<vmem>>, vector<1x32xf32>
    %222 = vector.shape_cast %221 : vector<1x32xf32> to vector<1x1x32xf32>
    %223 = vector.broadcast %222 : vector<1x1x32xf32> to vector<2x8x32xf32>
    %224 = arith.addf %220, %223 : vector<2x8x32xf32>
    %225 = arith.mulf %224, %224 : vector<2x8x32xf32>
    %cst_90 = arith.constant dense<0.000000e+00> : vector<2x8xf32>
    %226 = vector.multi_reduction <add>, %225, %cst_90 [2] : vector<2x8x32xf32> to vector<2x8xf32>
    %227 = vector.shape_cast %226 : vector<2x8xf32> to vector<2x8x1xf32>
    %cst_91 = arith.constant 1.000000e-24 : f32
    %228 = vector.broadcast %cst_91 : f32 to vector<2x8x1xf32>
    %229 = arith.maximumf %227, %228 : vector<2x8x1xf32>
    %230 = math.rsqrt %229 : vector<2x8x1xf32>
    %231 = vector.broadcast %230 : vector<2x8x1xf32> to vector<2x8x32xf32>
    %232 = arith.mulf %224, %231 : vector<2x8x32xf32>
    %c0_92 = arith.constant 0 : index
    %c0_93 = arith.constant 0 : index
    %c0_94 = arith.constant 0 : index
    %233 = vector.load %arg21[%c0_92, %c0_93, %c0_94] : memref<2x8x32xf32, #tpu.memory_space<vmem>>, vector<2x8x32xf32>
    tpu.vector_store %arg21[%c0_92, %c0_93, %c0_94], %232 {strides = array<i32>} : memref<2x8x32xf32, #tpu.memory_space<vmem>>, vector<2x8x32xf32>,
    %cst_95 = arith.constant dense<0xFF800000> : vector<2x32xf32>
    %234 = vector.multi_reduction <maximumf>, %232, %cst_95 [1] : vector<2x8x32xf32> to vector<2x32xf32>
    %235 = arith.truncf %234 : vector<2x32xf32> to vector<2x32xbf16>
    %c0_96 = arith.constant 0 : index
    %c0_97 = arith.constant 0 : index
    %236 = vector.load %arg15[%c0_96, %c0_97] : memref<32x32xf32, #tpu.memory_space<vmem>>, vector<32x32xf32>
    %237 = arith.truncf %236 : vector<32x32xf32> to vector<32x32xbf16>
    %cst_98 = arith.constant dense<0.000000e+00> : vector<2x32xf32>
    %238 = tpu.matmul %235, %237, %cst_98 {dimension_numbers = #tpu.dot_dimension_numbers<[1], [0], [0], [1], [0, 0, 1, 1], [], []>} : vector<2x32xbf16>, vector<32x32xbf16>, vector<2x32xf32> -> vector<2x32xf32>
    %c0_99 = arith.constant 0 : index
    %c0_100 = arith.constant 0 : index
    %239 = vector.load %arg16[%c0_99, %c0_100] : memref<1x32xf32, #tpu.memory_space<vmem>>, vector<1x32xf32>
    %240 = vector.broadcast %239 : vector<1x32xf32> to vector<2x32xf32>
    %241 = arith.addf %238, %240 : vector<2x32xf32>
    %cst_101 = arith.constant 0.000000e+00 : f32
    %242 = vector.broadcast %cst_101 : f32 to vector<2x32xf32>
    %243 = arith.maximumf %241, %242 : vector<2x32xf32>
    %244 = arith.truncf %243 : vector<2x32xf32> to vector<2x32xbf16>
    %c0_102 = arith.constant 0 : index
    %c0_103 = arith.constant 0 : index
    %245 = vector.load %arg17[%c0_102, %c0_103] : memref<32x32xf32, #tpu.memory_space<vmem>>, vector<32x32xf32>
    %246 = arith.truncf %245 : vector<32x32xf32> to vector<32x32xbf16>
    %cst_104 = arith.constant dense<0.000000e+00> : vector<2x32xf32>
    %247 = tpu.matmul %244, %246, %cst_104 {dimension_numbers = #tpu.dot_dimension_numbers<[1], [0], [0], [1], [0, 0, 1, 1], [], []>} : vector<2x32xbf16>, vector<32x32xbf16>, vector<2x32xf32> -> vector<2x32xf32>
    %c0_105 = arith.constant 0 : index
    %c0_106 = arith.constant 0 : index
    %248 = vector.load %arg18[%c0_105, %c0_106] : memref<1x32xf32, #tpu.memory_space<vmem>>, vector<1x32xf32>
    %249 = vector.broadcast %248 : vector<1x32xf32> to vector<2x32xf32>
    %250 = arith.addf %247, %249 : vector<2x32xf32>
    %c0_107 = arith.constant 0 : index
    %c0_108 = arith.constant 0 : index
    %251 = vector.load %arg22[%c0_107, %c0_108] : memref<2x32xf32, #tpu.memory_space<vmem>>, vector<2x32xf32>
    tpu.vector_store %arg22[%c0_107, %c0_108], %250 {strides = array<i32>} : memref<2x32xf32, #tpu.memory_space<vmem>>, vector<2x32xf32>,
    return
  }
  func.func @transform_0(%arg0: i32) -> (i32, i32, i32) {
    %c0_i32 = arith.constant 0 : i32
    %c0_i32_0 = arith.constant 0 : i32
    %c0_i32_1 = arith.constant 0 : i32
    %c0_i32_2 = arith.constant 0 : i32
    return %c0_i32, %c0_i32_0, %c0_i32_1 : i32, i32, i32
  }
  func.func @transform_1(%arg0: i32) -> (i32, i32, i32) {
    %c0_i32 = arith.constant 0 : i32
    %c0_i32_0 = arith.constant 0 : i32
    %c0_i32_1 = arith.constant 0 : i32
    %c0_i32_2 = arith.constant 0 : i32
    return %c0_i32, %c0_i32_0, %c0_i32_1 : i32, i32, i32
  }
  func.func @transform_2(%arg0: i32) -> (i32, i32) {
    %c0_i32 = arith.constant 0 : i32
    %c0_i32_0 = arith.constant 0 : i32
    %c0_i32_1 = arith.constant 0 : i32
    return %c0_i32, %c0_i32_0 : i32, i32
  }
  func.func @transform_3(%arg0: i32) -> (i32, i32) {
    %c0_i32 = arith.constant 0 : i32
    %c0_i32_0 = arith.constant 0 : i32
    %c0_i32_1 = arith.constant 0 : i32
    return %c0_i32, %c0_i32_0 : i32, i32
  }
  func.func @transform_4(%arg0: i32) -> (i32, i32) {
    %c0_i32 = arith.constant 0 : i32
    %c0_i32_0 = arith.constant 0 : i32
    %c0_i32_1 = arith.constant 0 : i32
    return %c0_i32, %c0_i32_0 : i32, i32
  }
  func.func @transform_5(%arg0: i32) -> (i32, i32) {
    %c0_i32 = arith.constant 0 : i32
    %c0_i32_0 = arith.constant 0 : i32
    %c0_i32_1 = arith.constant 0 : i32
    return %c0_i32, %c0_i32_0 : i32, i32
  }
  func.func @transform_6(%arg0: i32) -> (i32, i32) {
    %c0_i32 = arith.constant 0 : i32
    %c0_i32_0 = arith.constant 0 : i32
    %c0_i32_1 = arith.constant 0 : i32
    return %c0_i32, %c0_i32_0 : i32, i32
  }
  func.func @transform_7(%arg0: i32) -> (i32, i32) {
    %c0_i32 = arith.constant 0 : i32
    %c0_i32_0 = arith.constant 0 : i32
    %c0_i32_1 = arith.constant 0 : i32
    return %c0_i32, %c0_i32_0 : i32, i32
  }
  func.func @transform_8(%arg0: i32) -> (i32, i32) {
    %c0_i32 = arith.constant 0 : i32
    %c0_i32_0 = arith.constant 0 : i32
    %c0_i32_1 = arith.constant 0 : i32
    return %c0_i32, %c0_i32_0 : i32, i32
  }
  func.func @transform_9(%arg0: i32) -> (i32, i32) {
    %c0_i32 = arith.constant 0 : i32
    %c0_i32_0 = arith.constant 0 : i32
    %c0_i32_1 = arith.constant 0 : i32
    return %c0_i32, %c0_i32_0 : i32, i32
  }
  func.func @transform_10(%arg0: i32) -> (i32, i32) {
    %c0_i32 = arith.constant 0 : i32
    %c0_i32_0 = arith.constant 0 : i32
    %c0_i32_1 = arith.constant 0 : i32
    return %c0_i32, %c0_i32_0 : i32, i32
  }
  func.func @transform_11(%arg0: i32) -> (i32, i32) {
    %c0_i32 = arith.constant 0 : i32
    %c0_i32_0 = arith.constant 0 : i32
    %c0_i32_1 = arith.constant 0 : i32
    return %c0_i32, %c0_i32_0 : i32, i32
  }
  func.func @transform_12(%arg0: i32) -> (i32, i32) {
    %c0_i32 = arith.constant 0 : i32
    %c0_i32_0 = arith.constant 0 : i32
    %c0_i32_1 = arith.constant 0 : i32
    return %c0_i32, %c0_i32_0 : i32, i32
  }
  func.func @transform_13(%arg0: i32) -> (i32, i32) {
    %c0_i32 = arith.constant 0 : i32
    %c0_i32_0 = arith.constant 0 : i32
    %c0_i32_1 = arith.constant 0 : i32
    return %c0_i32, %c0_i32_0 : i32, i32
  }
  func.func @transform_14(%arg0: i32) -> (i32, i32) {
    %c0_i32 = arith.constant 0 : i32
    %c0_i32_0 = arith.constant 0 : i32
    %c0_i32_1 = arith.constant 0 : i32
    return %c0_i32, %c0_i32_0 : i32, i32
  }
  func.func @transform_15(%arg0: i32) -> (i32, i32) {
    %c0_i32 = arith.constant 0 : i32
    %c0_i32_0 = arith.constant 0 : i32
    %c0_i32_1 = arith.constant 0 : i32
    return %c0_i32, %c0_i32_0 : i32, i32
  }
  func.func @transform_16(%arg0: i32) -> (i32, i32) {
    %c0_i32 = arith.constant 0 : i32
    %c0_i32_0 = arith.constant 0 : i32
    %c0_i32_1 = arith.constant 0 : i32
    return %c0_i32, %c0_i32_0 : i32, i32
  }
  func.func @transform_17(%arg0: i32) -> (i32, i32) {
    %c0_i32 = arith.constant 0 : i32
    %c0_i32_0 = arith.constant 0 : i32
    %c0_i32_1 = arith.constant 0 : i32
    return %c0_i32, %c0_i32_0 : i32, i32
  }
  func.func @transform_18(%arg0: i32) -> (i32, i32, i32) {
    %c0_i32 = arith.constant 0 : i32
    %c0_i32_0 = arith.constant 0 : i32
    %c0_i32_1 = arith.constant 0 : i32
    %c0_i32_2 = arith.constant 0 : i32
    return %c0_i32, %c0_i32_0, %c0_i32_1 : i32, i32, i32
  }
  func.func @transform_19(%arg0: i32) -> (i32, i32, i32) {
    %c0_i32 = arith.constant 0 : i32
    %c0_i32_0 = arith.constant 0 : i32
    %c0_i32_1 = arith.constant 0 : i32
    %c0_i32_2 = arith.constant 0 : i32
    return %c0_i32, %c0_i32_0, %c0_i32_1 : i32, i32, i32
  }
  func.func @transform_20(%arg0: i32) -> (i32, i32, i32) {
    %c0_i32 = arith.constant 0 : i32
    %c0_i32_0 = arith.constant 0 : i32
    %c0_i32_1 = arith.constant 0 : i32
    %c0_i32_2 = arith.constant 0 : i32
    return %c0_i32, %c0_i32_0, %c0_i32_1 : i32, i32, i32
  }
  func.func @transform_21(%arg0: i32) -> (i32, i32) {
    %c0_i32 = arith.constant 0 : i32
    %c0_i32_0 = arith.constant 0 : i32
    %c0_i32_1 = arith.constant 0 : i32
    return %c0_i32, %c0_i32_0 : i32, i32
  }
}

</mosaic_0001>

<bundles_post_ra>
// kernel: tpu_custom_call.1
= control target key start
LH: loop header
LB: loop body
LE: loop exit
PB: predicated region body
PF: predicated region fallthrough
CT: control target
= control target key end

     0   :  { %s1895_s0 = inlined_call_operand.hbm [shape: f32[2,8,32], index: 0, kind: input, shape index: {}]   ;;  %s1896_s1 = inlined_call_operand.hbm [shape: f32[2,8,8], index: 1, kind: input, shape index: {}]   ;;  %s1897_s2 = inlined_call_operand.vmem [shape: f32[32,32], index: 2, kind: input, shape index: {}]   ;;  %s1898_s3 = inlined_call_operand.vmem [shape: f32[1,32], index: 3, kind: input, shape index: {}]   ;;  %s1899_s4 = inlined_call_operand.hbm [shape: f32[32,32], index: 4, kind: input, shape index: {}]   ;;  %s1900_s5 = inlined_call_operand.hbm [shape: f32[1,32], index: 5, kind: input, shape index: {}]   ;;  %s1901_s6 = inlined_call_operand.vmem [shape: f32[32,4], index: 6, kind: input, shape index: {}]   ;;  %s1902_s7 = inlined_call_operand.vmem [shape: f32[1,4], index: 7, kind: input, shape index: {}]   ;;  %s1903_s8 = inlined_call_operand.vmem [shape: f32[4,32], index: 8, kind: input, shape index: {}]   ;;  %s1904_s9 = inlined_call_operand.vmem [shape: f32[1,32], index: 9, kind: input, shape index: {}]   ;;  %s1905_s10 = inlined_call_operand.hbm [shape: f32[32,32], index: 10, kind: input, shape index: {}]   ;;  %s1906_s11 = inlined_call_operand.vmem [shape: f32[1,32], index: 11, kind: input, shape index: {}]   ;;  %s1907_s12 = inlined_call_operand.hbm [shape: f32[32,32], index: 12, kind: input, shape index: {}]   ;;  %s1908_s13 = inlined_call_operand.vmem [shape: f32[1,32], index: 13, kind: input, shape index: {}]   ;;  %s1909_s14 = inlined_call_operand.hbm [shape: f32[32,32], index: 14, kind: input, shape index: {}]   ;;  %s1910_s15 = inlined_call_operand.vmem [shape: f32[1,32], index: 15, kind: input, shape index: {}]   ;;  %s1911_s16 = inlined_call_operand.hbm [shape: f32[32,32], index: 16, kind: input, shape index: {}]   ;;  %s1912_s17 = inlined_call_operand.vmem [shape: f32[1,32], index: 17, kind: input, shape index: {}]   ;;  %s1913_s18 = inlined_call_operand.vmem [shape: f32[2,8,4], index: 18, kind: output, shape index: {0}]   ;;  %s1914_s19 = inlined_call_operand.hbm [shape: f32[2,8,8], index: 19, kind: output, shape index: {1}]   ;;  %s1915_s20 = inlined_call_operand.hbm [shape: f32[2,8,32], index: 20, kind: output, shape index: {2}]   ;;  %s1916_s21 = inlined_call_operand.hbm [shape: f32[2,32], index: 21, kind: output, shape index: {3}]  }
   0x1   :  { %1918 = sst [smem:[#allocation27_spill]] %s1895_s0 }
   0x2   :  { %1919 = sst [smem:[#allocation28_spill]] %s1896_s1 }
   0x3   :  { %1920 = sst [smem:[#allocation29_spill]] %s1897_s2 }
   0x4   :  { %1921 = sst [smem:[#allocation30_spill]] %s1898_s3 }
   0x5   :  { %1922 = sst [smem:[#allocation31_spill]] %s1899_s4 }
   0x6   :  { %1923 = sst [smem:[#allocation32_spill]] %s1900_s5 }
   0x7   :  { %1924 = sst [smem:[#allocation33_spill]] %s1916_s21 }
   0x8   :  { %27 = vsyncpa [#allocation3], 0 }
   0x9   :  { %28 = vsyncpa [#allocation6], 0 }
   0xa   :  { %29 = vsyncpa [#allocation9], 0 }
   0xb   :  { %30 = vsyncpa [#allocation12], 0 }
   0xc   :  { %31 = vsyncpa [#allocation15], 0 }
   0xd   :  { %32 = vsyncpa [#allocation4], 0 }
   0xe   :  { %33 = vsyncpa [#allocation18], 0  ;;  %s1925_s26 = sld [smem:[#allocation28_spill]]  ;;  %s1528_s3 = smov [#allocation5]  }
   0xf   :  { %s53_s28 = sshll.u32 %s1528_s3, 4  ;;  %s1926_s4 = sld [smem:[#allocation32_spill]]  ;;  %s54_s28 = int_to_ptr.vmem [resolvable:$true] %s53_s28 }
  0x10   :  { %s1529_s5 = smov 128   ;;  %s1530_s22 = smov 8  }
  0x11   :  { %s1531_s23 = smov [#allocation8]   ;;  %s115_s25 = sshll.u32 %s1907_s12, 4  ;;  %s116_s25 = int_to_ptr.hbm [resolvable:$true] %s115_s25 }
  0x12   :  { %s84_s1 = sshll.u32 %s1531_s23, 4  ;;  %s1927_s29 = sld [smem:[#allocation27_spill]]  ;;  %s85_s1 = int_to_ptr.vmem [resolvable:$true] %s84_s1 }
  0x13   :  { %s1928_s12 = sld [smem:[#allocation31_spill]]  ;;  %s1534_s3 = smov [#allocation7]  }
  0x14   :  { %s51_s27 = sshll.u32 %s1925_s26, 4  ;;  %s100_s26 = sshll.u32 %s1905_s10, 4  ;;  %s52_s27 = int_to_ptr.hbm [resolvable:$true] %s51_s27  ;;  %s101_s26 = int_to_ptr.hbm [resolvable:$true] %s100_s26 }
  0x15   :  { %s82_s30 = sshll.u32 %s1926_s4, 4  ;;  %s1532_s4 = smov [#allocation11]   ;;  %s83_s30 = int_to_ptr.hbm [resolvable:$true] %s82_s30 }
  0x16   :  { %59 = dma.hbm_to_vmem [thread:$0]  %s52_s27, 256, %s54_s28, [#allocation6], %s1529_s5, %s1529_s5, %s1530_s22  }
  0x17   :  { %87 = dma.hbm_to_vmem [thread:$0]  %s83_s30, 16, %s85_s1, [#allocation9]  }
  0x18   :  { %s38_s0 = sshll.u32 %s1927_s29, 4  ;;  %s117_s21 = sshll.u32 %s1532_s4, 4  ;;  %s39_s0 = int_to_ptr.hbm [resolvable:$true] %s38_s0  ;;  %s118_s21 = int_to_ptr.vmem [resolvable:$true] %s117_s21 }
  0x19   :  { %123 = dma.hbm_to_vmem [thread:$0]  %s116_s25, 512, %s118_s21, [#allocation12], %s1529_s5, %s1529_s5, %s1530_s22  }
  0x1a   :  { %s1533_s27 = smov [#allocation2]   ;;  %s68_s2 = sshll.u32 %s1928_s12, 4  ;;  %s69_s2 = int_to_ptr.hbm [resolvable:$true] %s68_s2 }
  0x1b   :  { %s40_s28 = sshll.u32 %s1533_s27, 4  ;;  %s70_s29 = sshll.u32 %s1534_s3, 4  ;;  %s41_s28 = int_to_ptr.vmem [resolvable:$true] %s40_s28  ;;  %s71_s29 = int_to_ptr.vmem [resolvable:$true] %s70_s29 }
  0x1c   :  { %46 = dma.hbm_to_vmem [thread:$0]  %s39_s0, 256, %s41_s28, [#allocation3], %s1529_s5, %s1529_s5, %s1530_s22  }
  0x1d   :  { %76 = dma.hbm_to_vmem [thread:$0]  %s69_s2, 512, %s71_s29, [#allocation6], %s1529_s5, %s1529_s5, %s1530_s22  }
  0x1e   :  { %s1535_s21 = smov [#allocation10]   ;;  %s130_s23 = sshll.u32 %s1909_s14, 4  ;;  %s131_s23 = int_to_ptr.hbm [resolvable:$true] %s130_s23 }
  0x1f   :  { %s102_s25 = sshll.u32 %s1535_s21, 4  ;;  %s145_s28 = sshll.u32 %s1911_s16, 4  ;;  %s103_s25 = int_to_ptr.vmem [resolvable:$true] %s102_s25  ;;  %s146_s28 = int_to_ptr.hbm [resolvable:$true] %s145_s28 }
  0x20   :  { %108 = dma.hbm_to_vmem [thread:$0]  %s101_s26, 512, %s103_s25, [#allocation9], %s1529_s5, %s1529_s5, %s1530_s22  }
  0x21   :  { %s1536_s24 = smov [#allocation13]   ;;  %s1537_s2 = smov [#allocation14]  }
  0x22   :  { %s132_s12 = sshll.u32 %s1536_s24, 4  ;;  %s147_s14 = sshll.u32 %s1537_s2, 4  ;;  %s133_s12 = int_to_ptr.vmem [resolvable:$true] %s132_s12  ;;  %s148_s14 = int_to_ptr.vmem [resolvable:$true] %s147_s14 }
  0x23   :  { %138 = dma.hbm_to_vmem [thread:$0]  %s131_s23, 512, %s133_s12, [#allocation12], %s1529_s5, %s1529_s5, %s1530_s22  }
  0x24   :  { %153 = dma.hbm_to_vmem [thread:$0]  %s146_s28, 512, %s148_s14, [#allocation15], %s1529_s5, %s1529_s5, %s1530_s22  }
  0x25   :  { %1514 = dma.done.wait [#allocation3], 256  }
  0x26   :  { %1515 = vsyncadd [#allocation3], 4294967040 }
  0x27   :  { %1516 = dma.done.wait [#allocation6], 768  }
  0x28   :  { %1517 = vsyncadd [#allocation6], 4294966528 }
  0x29   :  { %1518 = dma.done.wait [#allocation9], 528  }
  0x2a   :  { %1519 = vsyncadd [#allocation9], 4294966768 }
  0x2b   :  { %1520 = dma.done.wait [#allocation12], 1024  }
  0x2c   :  { %1521 = vsyncadd [#allocation12], 4294966272 }
  0x2d   :  { %1522 = dma.done.wait [#allocation15], 512  }
  0x2e   :  { %1523 = vsyncadd [#allocation15], 4294966784  ;;  %v193_v0 = vlaneseq  ;;  %v1538_v3 = vmov 0.0   ;;  %v189_v5 = vld [vmem:[#allocation2] sm:$0xff]  ;;  %vm210_vm1 = vcmask 1043456   ;;  %v190_v6 = vld [vmem:[#allocation2 + $0x8] sm:$0xff] }
  0x2f   :  { %v191_v7 = vld [vmem:[#allocation5] sm:$0xff]  ;;  %v1700_v8 = vpack.c.bf16 %v189_v5, %v189_v5  ;;  %v1702_v9 = vpack.c.bf16 %v190_v6, %v190_v6  ;;  %vm206_vm2 = vcmask 64512   ;;  %v192_v11 = vld [vmem:[#allocation5 + $0x8] sm:$0xff]  ;;  %s1929_s1 = sld [smem:[#allocation29_spill]]  ;;  %vm253_vm3 = vcmask 261120   ;;  %s1121_s12 = sshll.u32 %s1915_s20, 4  ;;  %s1122_s12 = int_to_ptr.hbm [resolvable:$true] %s1121_s12 }
  0x30   :  { %v194_v1 = vshrl.u32 %v193_v0, 7  ;;  %v196_v2 = vand.u32 127, %v193_v0  ;;  %s1930_s10 = sld [smem:[#allocation30_spill]]  ;;  %v1539_v61 = vmov 64.0   ;;  %s1108_s14 = sshll.u32 %s1914_s19, 4  ;;  %s1109_s14 = int_to_ptr.hbm [resolvable:$true] %s1108_s14 }
  0x31   :  { %v212_v16 = vsel %vm210_vm1, %v1700_v8, 0  ;;  %v231_v17 = vsel %vm210_vm1, %v1702_v9, 0  ;;  %s1541_s16 = smov [#allocation16]   ;;  %s1931_s29 = sld [smem:[#allocation33_spill]] }
  0x32   :  { %vm197_vm0 = vcmp.eq.s32.totalorder %v194_v1, %v196_v2  ;;  %221 = vmatpush.bf16.msra.mxu0 %v212_v16  ;;  %240 = vmatpush.bf16.msra.mxu1 %v231_v17  ;;  %s1106_s30 = sshll.u32 %s1541_s16, 4  ;;  %s1107_s30 = int_to_ptr.vmem [resolvable:$true] %s1106_s30 }
  0x33   :  { %v1698_v4 = vsel %vm197_vm0, 1.0, %v1538_v3 }
  0x34   :  { %v200_v10 = vadd.f32 %v1698_v4, %v191_v7  ;;  %v201_v14 = vadd.f32 %v1698_v4, %v192_v11 }
  0x35   :  { %v249_v12 = vld [vmem:[%s1929_s1 + $0x10] sm:$0xff]  ;;  %v250_v13 = vld [vmem:[%s1929_s1 + $0x18] sm:$0xff]  ;;  %v247_v20 = vld [vmem:[%s1929_s1] sm:$0xff] }
  0x36   :  { %v252_v15 = vpack.c.bf16 %v250_v13, %v249_v12  ;;  %v1716_v18 = vpack.c.bf16 %v200_v10, %v200_v10  ;;  %v1718_v19 = vpack.c.bf16 %v201_v14, %v201_v14  ;;  %v248_v21 = vld [vmem:[%s1929_s1 + $0x8] sm:$0xff]  ;;  %v1200_v28 = vld [vmem:[%s1930_s10] ss:$0 sm:$0xff]  ;;  %s1540_s10 = smov [#allocation17]   ;;  %s1542_s1 = smov [#allocation19]  }
  0x37   :  { %v251_v22 = vpack.c.bf16 %v248_v21, %v247_v20  ;;  %s1119_s0 = sshll.u32 %s1540_s10, 4  ;;  %s1135_s21 = sshll.u32 %s1931_s29, 4  ;;  %s1120_s0 = int_to_ptr.vmem [resolvable:$true] %s1119_s0  ;;  %s1136_s21 = int_to_ptr.hbm [resolvable:$true] %s1135_s21 }
  0x38   :  { %263 = vmatpush.bf16.msra.mxu2 %v252_v15  ;;  %1161 = vmatmul.msk.bf16.vlgmr.msra.gmra.mxu0 %vm206_vm2, %v1716_v18 }
  0x39   :  { %1162 = vmatmul.msk.bf16.vlgmr.msra.gmra.mxu1 %vm206_vm2, %v1718_v19 }
  0x3c   :  { %264 = vmatpush.bf16.msra.mxu2 %v251_v22 }
  0xb5   :  { %v223_v23 = vpop.f32.mrf.mxu0 }
  0xb6   :  { %v242_v24 = vpop.f32.mrf.mxu1 }
  0xb7   :  { %v246_v25 = vpack.c.bf16 %v242_v24, %v223_v23 }
  0xb9   :  { %1163 = vmatmul.msk.bf16.vlgmr.msra.gmra.mxu2 %vm253_vm3, %v246_v25 }
  0xbd   :  { %v225_v26 = vpop.f32.mrf.mxu0 }
  0xbe   :  { %v244_v27 = vpop.f32.mrf.mxu1 }
 0x13c   :  { %v266_v29 = vpop.f32.mrf.mxu2 }
 0x13d   :  { %v275_v30 = vadd.f32 %v1200_v28, %v266_v29 }
 0x13f   :  { %v277_v31 = vmul.f32 %v275_v30, %v275_v30 }
 0x141   :  { %v279_v32 = vsel %vm253_vm3, %v277_v31, 0.0 }
 0x142   :  { %280 = vadd.xlane.f32.xlu0 %v279_v32 }
 0x144   :  { %v268_v33 = vpop.f32.mrf.mxu2 }
 0x145   :  { %v276_v34 = vadd.f32 %v1200_v28, %v268_v33 }
 0x147   :  { %v278_v35 = vmul.f32 %v276_v34, %v276_v34 }
 0x149   :  { %v282_v36 = vsel %vm253_vm3, %v278_v35, 0.0 }
 0x14a   :  { %283 = vadd.xlane.f32.xlu0 %v282_v36 }
 0x1b5   :  { %v281_v37 = vpop.xlane.xlu0 %280 }
 0x1b6   :  { %v285_v38 = vmax.f32 %v281_v37, 1e-24  ;;  %v388_v37 = vld [vmem:[#allocation7 + $0x10] sm:$0xff] }
 0x1b8   :  { %1208 = vrsqrt.f32 %v285_v38  ;;  %vm293_vm5 = vweird.f32 %v285_v38 }
 0x1bd   :  { %v284_v39 = vpop.xlane.xlu0 %283 }
 0x1be   :  { %v1209_v40 = vpop.eup %1208  ;;  %v286_v41 = vmax.f32 %v284_v39, 1e-24 }
 0x1bf   :  { %v288_v42 = vmul.f32 %v1209_v40, %v285_v38  ;;  %vm294_vm4 = vweird.f32 %v1209_v40  ;;  %v389_v38 = vld [vmem:[#allocation7 + $0x18] sm:$0xff] }
 0x1c0   :  { %1210 = vrsqrt.f32 %v286_v41  ;;  %vm295_vm6 = vmor %vm293_vm5, %vm294_vm4  ;;  %vm303_vm8 = vweird.f32 %v286_v41  ;;  %v391_v39 = vpack.c.bf16 %v389_v38, %v388_v37  ;;  %v520_v37 = vld [vmem:[%s1901_s6 + $0x18] sm:$0xff] }
 0x1c1   :  { %v289_v43 = vmul.f32 %v1209_v40, %v288_v42  ;;  %1212 = vrcp.f32 %v1539_v61 }
 0x1c2   :  { %401 = vmatpush.bf16.msrb.mxu1 %v391_v39 }
 0x1c3   :  { %v290_v44 = vmul.f32 0.5, %v289_v43 }
 0x1c5   :  { %v291_v45 = vsub.f32 1.5, %v290_v44 }
 0x1c6   :  { %v1211_v46 = vpop.eup %1210 }
 0x1c7   :  { %v298_v47 = vmul.f32 %v1211_v46, %v286_v41  ;;  %v292_v48 = vmul.f32 %v1209_v40, %v291_v45  ;;  %vm304_vm7 = vweird.f32 %v1211_v46  ;;  %v1213_v62 = vpop.eup %1212  ;;  %v387_v41 = vld [vmem:[#allocation7 + $0x8] sm:$0xff] }
 0x1c8   :  { %vm305_vm9 = vmor %vm303_vm8, %vm304_vm7  ;;  %v319_v63 = vmul.f32 64.0, %v1213_v62  ;;  %vm323_vm10 = vweird.f32 %v1213_v62 }
 0x1c9   :  { %v299_v49 = vmul.f32 %v1211_v46, %v298_v47  ;;  %v296_v50 = vsel %vm295_vm6, %v1209_v40, %v292_v48  ;;  %v386_v40 = vld [vmem:[#allocation7] sm:$0xff] }
 0x1ca   :  { %v307_v51 = vmul.f32 %v296_v50, %v275_v30  ;;  %v320_v0 = vsub.f32 1.0, %v319_v63  ;;  %v390_v42 = vpack.c.bf16 %v387_v41, %v386_v40  ;;  %v1201_v48 = vld [vmem:[#allocation8] ss:$0 sm:$0xff] }
 0x1cb   :  { %v300_v52 = vmul.f32 0.5, %v299_v49 }
 0x1cc   :  { %v309_v53 = vmax.f32 %v307_v51, 0.0  ;;  %v321_v2 = vmul.f32 %v1213_v62, %v320_v0  ;;  %402 = vmatpush.bf16.msrb.mxu1 %v390_v42 }
 0x1cd   :  { %v301_v54 = vsub.f32 1.5, %v300_v52 }
 0x1ce   :  { %v311_v55 = vsel %vm253_vm3, %v309_v53, 0.0  ;;  %v322_v3 = vadd.f32 %v1213_v62, %v321_v2 }
 0x1cf   :  { %312 = vadd.xlane.f32.xlu1 %v311_v55  ;;  %v302_v56 = vmul.f32 %v1211_v46, %v301_v54 }
 0x1d0   :  { %v1738_v5 = vsel %vm323_vm10, %v1213_v62, %v322_v3  ;;  %vm548_vm10 = vcmask 31744  }
 0x1d1   :  { %v306_v57 = vsel %vm305_vm9, %v1211_v46, %v302_v56 }
 0x1d2   :  { %v308_v58 = vmul.f32 %v306_v57, %v276_v34 }
 0x1d4   :  { %v310_v59 = vmax.f32 %v308_v58, 0.0 }
 0x1d6   :  { %v314_v60 = vsel %vm253_vm3, %v310_v59, 0.0 }
 0x1d7   :  { %315 = vadd.xlane.f32.xlu1 %v314_v60 }
 0x242   :  { %v313_v1 = vpop.xlane.xlu1 %312 }
 0x24a   :  { %v316_v6 = vpop.xlane.xlu1 %315 }
 0x24b   :  { %v317_v7 = vadd.f32 %v316_v6, %v313_v1 }
 0x24d   :  { %v325_v10 = vmul.f32 %v1738_v5, %v317_v7 }
 0x24f   :  { %v326_v11 = vsub.f32 %v309_v53, %v325_v10  ;;  %v327_v14 = vsub.f32 %v310_v59, %v325_v10 }
 0x251   :  { %v328_v12 = vmul.f32 %v326_v11, %v326_v11  ;;  %v329_v15 = vmul.f32 %v327_v14, %v327_v14 }
 0x253   :  { %v330_v13 = vsel %vm253_vm3, %v328_v12, 0.0  ;;  %v333_v16 = vsel %vm253_vm3, %v329_v15, 0.0 }
 0x254   :  { %331 = vadd.xlane.f32.xlu2 %v330_v13 }
 0x25c   :  { %334 = vadd.xlane.f32.xlu2 %v333_v16 }
 0x2c7   :  { %v332_v17 = vpop.xlane.xlu2 %331 }
 0x2cf   :  { %v335_v20 = vpop.xlane.xlu2 %334 }
 0x2d0   :  { %v336_v21 = vadd.f32 %v335_v20, %v332_v17 }
 0x2d2   :  { %v337_v22 = vmul.f32 %v336_v21, %v1738_v5 }
 0x2d4   :  { %v338_v23 = vadd.f32 1e-05, %v337_v22 }
 0x2d6   :  { %1214 = vrsqrt.f32 %v338_v23  ;;  %vm345_vm12 = vweird.f32 %v338_v23 }
 0x2dc   :  { %v1215_v24 = vpop.eup %1214 }
 0x2dd   :  { %v340_v25 = vmul.f32 %v1215_v24, %v338_v23  ;;  %vm346_vm11 = vweird.f32 %v1215_v24 }
 0x2de   :  { %vm347_vm13 = vmor %vm345_vm12, %vm346_vm11 }
 0x2df   :  { %v341_v26 = vmul.f32 %v1215_v24, %v340_v25 }
 0x2e1   :  { %v342_v27 = vmul.f32 0.5, %v341_v26 }
 0x2e3   :  { %v343_v28 = vsub.f32 1.5, %v342_v27 }
 0x2e5   :  { %v344_v29 = vmul.f32 %v1215_v24, %v343_v28 }
 0x2e7   :  { %v348_v30 = vsel %vm347_vm13, %v1215_v24, %v344_v29 }
 0x2e8   :  { %v349_v31 = vmul.f32 %v348_v30, %v326_v11  ;;  %v350_v32 = vmul.f32 %v348_v30, %v327_v14 }
 0x2ea   :  { %v351_v33 = vpack.c.bf16 %v349_v31, %v349_v31  ;;  %v352_v34 = vpack.c.bf16 %v350_v32, %v350_v32 }
 0x2ec   :  { %v354_v35 = vsel %vm210_vm1, %v351_v33, 0  ;;  %v370_v36 = vsel %vm210_vm1, %v352_v34, 0 }
 0x2ed   :  { %363 = vmatpush.bf16.msra.mxu3 %v354_v35  ;;  %379 = vmatpush.bf16.msrb.mxu0 %v370_v36  ;;  %v519_v36 = vld [vmem:[%s1901_s6 + $0x10] sm:$0xff] }
 0x2ee   :  { %v522_v38 = vpack.c.bf16 %v520_v37, %v519_v36 }
 0x2f0   :  { %1164 = vmatmul.msk.bf16.vlgmr.msra.gmra.mxu3 %vm206_vm2, %v1716_v18  ;;  %1165 = vmatmul.msk.bf16.vlgmr.msrb.gmra.mxu0 %vm206_vm2, %v1718_v19 }
 0x2f1   :  { %532 = vmatpush.bf16.msra.mxu0 %v522_v38 }
 0x36d   :  { %v381_v43 = vpop.f32.mrf.mxu0 }
 0x373   :  { %v365_v44 = vpop.f32.mrf.mxu3 }
 0x374   :  { %v385_v45 = vpack.c.bf16 %v381_v43, %v365_v44 }
 0x375   :  { %v383_v46 = vpop.f32.mrf.mxu0 }
 0x376   :  { %1166 = vmatmul.msk.bf16.vlgmr.msrb.gmra.mxu1 %vm253_vm3, %v385_v45 }
 0x37b   :  { %v367_v47 = vpop.f32.mrf.mxu3 }
 0x3f3   :  { %v404_v49 = vpop.f32.mrf.mxu1 }
 0x3f4   :  { %v413_v50 = vadd.f32 %v1201_v48, %v404_v49 }
 0x3f6   :  { %v415_v51 = vmul.f32 %v413_v50, %v413_v50 }
 0x3f8   :  { %v417_v52 = vsel %vm253_vm3, %v415_v51, 0.0 }
 0x3f9   :  { %418 = vadd.xlane.f32.xlu0 %v417_v52 }
 0x3fb   :  { %v406_v53 = vpop.f32.mrf.mxu1 }
 0x3fc   :  { %v414_v54 = vadd.f32 %v1201_v48, %v406_v53 }
 0x3fe   :  { %v416_v55 = vmul.f32 %v414_v54, %v414_v54 }
 0x400   :  { %v420_v56 = vsel %vm253_vm3, %v416_v55, 0.0  ;;  %v518_v55 = vld [vmem:[%s1901_s6 + $0x8] sm:$0xff] }
 0x401   :  { %421 = vadd.xlane.f32.xlu1 %v420_v56 }
 0x46c   :  { %v419_v57 = vpop.xlane.xlu0 %418 }
 0x46d   :  { %v423_v58 = vmax.f32 %v419_v57, 1e-24  ;;  %v581_v57 = vsel %vm253_vm3, %v1700_v8, 0 }
 0x46e   :  { %590 = vmatpush.bf16.xpose.msra.mxu1 %v581_v57 }
 0x46f   :  { %1216 = vrsqrt.f32 %v423_v58  ;;  %vm431_vm15 = vweird.f32 %v423_v58 }
 0x474   :  { %v422_v59 = vpop.xlane.xlu1 %421 }
 0x475   :  { %v1217_v60 = vpop.eup %1216  ;;  %v424_v61 = vmax.f32 %v422_v59, 1e-24  ;;  %1170 = vmatmul.msk.bf16.vlgmr.msra.gmra.mxu1 %vm253_vm3, %v1700_v8 }
 0x476   :  { %v426_v62 = vmul.f32 %v1217_v60, %v423_v58  ;;  %vm432_vm14 = vweird.f32 %v1217_v60  ;;  %v596_v58 = vsel %vm253_vm3, %v1702_v9, 0 }
 0x477   :  { %1218 = vrsqrt.f32 %v424_v61  ;;  %vm433_vm0 = vmor %vm431_vm15, %vm432_vm14  ;;  %vm441_vm5 = vweird.f32 %v424_v61 }
 0x478   :  { %v427_v63 = vmul.f32 %v1217_v60, %v426_v62 }
 0x47a   :  { %v428_v0 = vmul.f32 0.5, %v427_v63 }
 0x47c   :  { %v429_v1 = vsub.f32 1.5, %v428_v0 }
 0x47d   :  { %v1219_v2 = vpop.eup %1218 }
 0x47e   :  { %v436_v3 = vmul.f32 %v1219_v2, %v424_v61  ;;  %v430_v6 = vmul.f32 %v1217_v60, %v429_v1  ;;  %vm442_vm4 = vweird.f32 %v1219_v2 }
 0x47f   :  { %vm443_vm6 = vmor %vm441_vm5, %vm442_vm4 }
 0x480   :  { %v437_v7 = vmul.f32 %v1219_v2, %v436_v3  ;;  %v434_v10 = vsel %vm433_vm0, %v1217_v60, %v430_v6 }
 0x481   :  { %v445_v11 = vmul.f32 %v434_v10, %v413_v50 }
 0x482   :  { %v438_v12 = vmul.f32 0.5, %v437_v7 }
 0x483   :  { %v447_v13 = vmax.f32 %v445_v11, 0.0 }
 0x484   :  { %v439_v14 = vsub.f32 1.5, %v438_v12 }
 0x485   :  { %v449_v15 = vsel %vm253_vm3, %v447_v13, 0.0 }
 0x486   :  { %450 = vadd.xlane.f32.xlu2 %v449_v15  ;;  %v440_v16 = vmul.f32 %v1219_v2, %v439_v14 }
 0x488   :  { %v444_v17 = vsel %vm443_vm6, %v1219_v2, %v440_v16  ;;  %v1202_v2 = vld [vmem:[%s1902_s7] ss:$0 sm:$0xff]  ;;  %s1133_s7 = sshll.u32 %s1542_s1, 4  ;;  %s1134_s7 = int_to_ptr.vmem [resolvable:$true] %s1133_s7 }
 0x489   :  { %v446_v20 = vmul.f32 %v444_v17, %v414_v54  ;;  %v517_v54 = vld [vmem:[%s1901_s6] sm:$0xff] }
 0x48a   :  { %v521_v56 = vpack.c.bf16 %v518_v55, %v517_v54 }
 0x48b   :  { %v448_v21 = vmax.f32 %v446_v20, 0.0 }
 0x48c   :  { %533 = vmatpush.bf16.msra.mxu0 %v521_v56 }
 0x48d   :  { %v452_v22 = vsel %vm253_vm3, %v448_v21, 0.0 }
 0x48e   :  { %453 = vadd.xlane.f32.xlu0 %v452_v22 }
 0x4f2   :  { %v592_v62 = vpop.f32.mrf.mxu1 }
 0x4f9   :  { %v451_v23 = vpop.xlane.xlu2 %450 }
 0x4fa   :  { %v594_v0 = vpop.f32.mrf.mxu1 }
 0x501   :  { %v454_v24 = vpop.xlane.xlu0 %453 }
 0x502   :  { %v455_v25 = vadd.f32 %v454_v24, %v451_v23 }
 0x504   :  { %v456_v26 = vmul.f32 %v455_v25, %v1738_v5 }
 0x506   :  { %v458_v27 = vsub.f32 %v448_v21, %v456_v26  ;;  %v457_v28 = vsub.f32 %v447_v13, %v456_v26  ;;  %v1172_v13 = vmul.f32 -1.442695, %v592_v62 }
 0x508   :  { %v460_v29 = vmul.f32 %v458_v27, %v458_v27  ;;  %v459_v30 = vmul.f32 %v457_v28, %v457_v28 }
 0x50a   :  { %v464_v31 = vsel %vm253_vm3, %v460_v29, 0.0  ;;  %v461_v32 = vsel %vm253_vm3, %v459_v30, 0.0 }
 0x50b   :  { %465 = vadd.xlane.f32.xlu2 %v464_v31  ;;  %462 = vadd.xlane.f32.xlu1 %v461_v32 }
 0x57e   :  { %v466_v33 = vpop.xlane.xlu2 %465  ;;  %v463_v34 = vpop.xlane.xlu1 %462 }
 0x57f   :  { %v467_v35 = vadd.f32 %v466_v33, %v463_v34 }
 0x581   :  { %v468_v39 = vmul.f32 %v467_v35, %v1738_v5 }
 0x583   :  { %v469_v40 = vadd.f32 1e-05, %v468_v39 }
 0x585   :  { %1220 = vrsqrt.f32 %v469_v40  ;;  %vm476_vm8 = vweird.f32 %v469_v40 }
 0x586   :  { %1222 = vpow2.f32 %v1172_v13 }
 0x58b   :  { %v1221_v41 = vpop.eup %1220 }
 0x58c   :  { %v471_v42 = vmul.f32 %v1221_v41, %v469_v40  ;;  %vm477_vm7 = vweird.f32 %v1221_v41  ;;  %v1223_v15 = vpop.eup %1222 }
 0x58d   :  { %vm478_vm9 = vmor %vm476_vm8, %vm477_vm7  ;;  %v617_v16 = vadd.f32 1.0, %v1223_v15 }
 0x58e   :  { %v472_v43 = vmul.f32 %v1221_v41, %v471_v42 }
 0x58f   :  { %vm624_vm11 = vweird.f32 %v617_v16  ;;  %v628_v30 = vand.u32 2147483647, %v617_v16 }
 0x590   :  { %v473_v44 = vmul.f32 0.5, %v472_v43 }
 0x591   :  { %vm629_vm0 = vcmp.eq.f32.partialorder %v628_v30, 8.507059e+37 }
 0x592   :  { %v474_v45 = vsub.f32 1.5, %v473_v44 }
 0x594   :  { %v475_v46 = vmul.f32 %v1221_v41, %v474_v45 }
 0x596   :  { %v479_v47 = vsel %vm478_vm9, %v1221_v41, %v475_v46 }
 0x597   :  { %v480_v48 = vmul.f32 %v479_v47, %v457_v28  ;;  %v481_v49 = vmul.f32 %v479_v47, %v458_v27  ;;  %v630_v27 = vand.u32 2147483648, %v617_v16 }
 0x599   :  { %v482_v50 = vpack.c.bf16 %v480_v48, %v480_v48  ;;  %v483_v51 = vpack.c.bf16 %v481_v49, %v481_v49  ;;  %v631_v31 = vor.u32 1.1754944e-38, %v630_v27 }
 0x59b   :  { %v485_v52 = vsel %vm210_vm1, %v482_v50, 0  ;;  %v501_v53 = vsel %vm210_vm1, %v483_v51, 0 }
 0x59c   :  { %494 = vmatpush.bf16.msrb.mxu3 %v485_v52  ;;  %510 = vmatpush.bf16.msrb.mxu2 %v501_v53 }
 0x59f   :  { %1167 = vmatmul.msk.bf16.vlgmr.msrb.gmra.mxu3 %vm206_vm2, %v1716_v18  ;;  %1168 = vmatmul.msk.bf16.vlgmr.msrb.gmra.mxu2 %vm206_vm2, %v1718_v19 }
 0x5a0   :  { %605 = vmatpush.bf16.xpose.msra.mxu3 %v596_v58 }
 0x5af   :  { %1171 = vmatmul.msk.bf16.vlgmr.msra.gmra.mxu3 %vm253_vm3, %v1702_v9 }
 0x622   :  { %v496_v18 = vpop.f32.mrf.mxu3  ;;  %v512_v19 = vpop.f32.mrf.mxu2 }
 0x623   :  { %v516_v59 = vpack.c.bf16 %v512_v19, %v496_v18 }
 0x625   :  { %1169 = vmatmul.msk.bf16.vlgmr.msra.gmra.mxu0 %vm253_vm3, %v516_v59 }
 0x62a   :  { %v498_v60 = vpop.f32.mrf.mxu3  ;;  %v514_v61 = vpop.f32.mrf.mxu2 }
 0x632   :  { %v607_v63 = vpop.f32.mrf.mxu3 }
 0x633   :  { %v1173_v14 = vmul.f32 -1.442695, %v607_v63 }
 0x635   :  { %1224 = vpow2.f32 %v1173_v14 }
 0x636   :  { %1226 = vrcp.f32 %v617_v16 }
 0x63a   :  { %v609_v1 = vpop.f32.mrf.mxu3 }
 0x63b   :  { %v1225_v17 = vpop.eup %1224 }
 0x63c   :  { %v618_v20 = vadd.f32 1.0, %v1225_v17  ;;  %v1227_v21 = vpop.eup %1226 }
 0x63d   :  { %v620_v22 = vmul.f32 %v1227_v21, %v617_v16  ;;  %vm625_vm12 = vweird.f32 %v1227_v21 }
 0x63e   :  { %1228 = vrcp.f32 %v618_v20  ;;  %vm626_vm13 = vmor %vm624_vm11, %vm625_vm12  ;;  %v645_v33 = vand.u32 2147483648, %v618_v20  ;;  %vm639_vm14 = vweird.f32 %v618_v20  ;;  %v643_v37 = vand.u32 2147483647, %v618_v20 }
 0x63f   :  { %v621_v24 = vsub.f32 1.0, %v620_v22 }
 0x640   :  { %v646_v38 = vor.u32 1.1754944e-38, %v645_v33  ;;  %vm644_vm5 = vcmp.eq.f32.partialorder %v643_v37, 8.507059e+37 }
 0x641   :  { %v622_v26 = vmul.f32 %v1227_v21, %v621_v24 }
 0x643   :  { %v623_v29 = vadd.f32 %v1227_v21, %v622_v26 }
 0x644   :  { %v1229_v23 = vpop.eup %1228 }
 0x645   :  { %v635_v25 = vmul.f32 %v1229_v23, %v618_v20  ;;  %vm640_vm15 = vweird.f32 %v1229_v23  ;;  %v627_v34 = vsel %vm626_vm13, %v1227_v21, %v623_v29  ;;  %vm701_vm13 = vcmask 1041408  }
 0x646   :  { %v632_v35 = vsel %vm629_vm0, %v631_v31, %v627_v34  ;;  %vm641_vm4 = vmor %vm639_vm14, %vm640_vm15 }
 0x647   :  { %v636_v28 = vsub.f32 1.0, %v635_v25  ;;  %649 = vst.msk [vmem:[#allocation16] sm:$0xff] %vm206_vm2, %v632_v35  ;;  %v651_v58 = vadd.f32 %v1698_v4, %v632_v35 }
 0x649   :  { %v637_v32 = vmul.f32 %v1229_v23, %v636_v28  ;;  %v1808_v60 = vpack.c.bf16 %v651_v58, %v651_v58 }
 0x64b   :  { %v638_v36 = vadd.f32 %v1229_v23, %v637_v32 }
 0x64d   :  { %v642_v39 = vsel %vm641_vm4, %v1229_v23, %v638_v36 }
 0x64e   :  { %v647_v40 = vsel %vm644_vm5, %v646_v38, %v642_v39 }
 0x64f   :  { %650 = vst.msk [vmem:[#allocation16 + $0x8] sm:$0xff] %vm206_vm2, %v647_v40  ;;  %v652_v0 = vadd.f32 %v1698_v4, %v647_v40 }
 0x650   :  { %1114 = dma.vmem_to_hbm [thread:$0]  %s1107_s30, 256, %s1109_s14, [#allocation4], %s1529_s5, %s1529_s5, %s1530_s22  }
 0x6a2   :  { %v535_v3 = vpop.f32.mrf.mxu0 }
 0x6a3   :  { %v1789_v8 = vadd.f32 %v1202_v2, %v535_v3  ;;  %v696_v3 = vld [vmem:[%s1903_s8] sm:$0xf] }
 0x6a5   :  { %v546_v9 = vmul.f32 %v1789_v8, %v1789_v8 }
 0x6a7   :  { %v549_v6 = vsel %vm548_vm10, %v546_v9, 0.0 }
 0x6a8   :  { %550 = vadd.xlane.f32.xlu0 %v549_v6 }
 0x6aa   :  { %v537_v7 = vpop.f32.mrf.mxu0 }
 0x6ab   :  { %v1794_v10 = vadd.f32 %v1202_v2, %v537_v7  ;;  %v1819_v2 = vpack.c.bf16 %v652_v0, %v652_v0 }
 0x6ad   :  { %v547_v11 = vmul.f32 %v1794_v10, %v1794_v10 }
 0x6af   :  { %v552_v12 = vsel %vm548_vm10, %v547_v11, 0.0 }
 0x6b0   :  { %553 = vadd.xlane.f32.xlu1 %v552_v12  ;;  %v1203_v12 = vld [vmem:[%s1904_s9] ss:$0 sm:$0xff] }
 0x71b   :  { %v551_v41 = vpop.xlane.xlu0 %550 }
 0x71c   :  { %v555_v42 = vmax.f32 %v551_v41, 1e-24 }
 0x71e   :  { %1230 = vrsqrt.f32 %v555_v42  ;;  %vm563_vm7 = vweird.f32 %v555_v42 }
 0x723   :  { %v554_v43 = vpop.xlane.xlu1 %553 }
 0x724   :  { %v1231_v44 = vpop.eup %1230  ;;  %v556_v45 = vmax.f32 %v554_v43, 1e-24 }
 0x725   :  { %v558_v46 = vmul.f32 %v1231_v44, %v555_v42  ;;  %vm564_vm6 = vweird.f32 %v1231_v44 }
 0x726   :  { %1232 = vrsqrt.f32 %v556_v45  ;;  %vm565_vm8 = vmor %vm563_vm7, %vm564_vm6  ;;  %vm573_vm11 = vweird.f32 %v556_v45 }
 0x727   :  { %v559_v47 = vmul.f32 %v1231_v44, %v558_v46 }
 0x729   :  { %v560_v48 = vmul.f32 0.5, %v559_v47 }
 0x72b   :  { %v561_v49 = vsub.f32 1.5, %v560_v48 }
 0x72c   :  { %v1233_v50 = vpop.eup %1232 }
 0x72d   :  { %v562_v51 = vmul.f32 %v1231_v44, %v561_v49  ;;  %v568_v52 = vmul.f32 %v1233_v50, %v556_v45  ;;  %vm574_vm9 = vweird.f32 %v1233_v50 }
 0x72e   :  { %vm575_vm12 = vmor %vm573_vm11, %vm574_vm9 }
 0x72f   :  { %v566_v53 = vsel %vm565_vm8, %v1231_v44, %v562_v51  ;;  %v569_v54 = vmul.f32 %v1233_v50, %v568_v52 }
 0x730   :  { %v577_v55 = vmul.f32 %v566_v53, %v1789_v8  ;;  %v697_v8 = vpack.c.bf16 %v696_v3, %v696_v3 }
 0x731   :  { %v570_v56 = vmul.f32 0.5, %v569_v54 }
 0x732   :  { %579 = vst.msk [vmem:[%s1913_s18] sm:$0xff] %vm548_vm10, %v577_v55  ;;  %v655_v57 = vpack.c.bf16 %v577_v55, %v577_v55  ;;  %v703_v9 = vsel %vm701_vm13, %v697_v8, 0 }
 0x733   :  { %v571_v18 = vsub.f32 1.5, %v570_v56  ;;  %712 = vmatpush.bf16.msrb.mxu1 %v703_v9 }
 0x734   :  { %v661_v19 = vsel %vm210_vm1, %v655_v57, 0 }
 0x735   :  { %v572_v59 = vmul.f32 %v1233_v50, %v571_v18  ;;  %670 = vmatpush.bf16.msra.mxu2 %v661_v19  ;;  %v829_v19 = vld [vmem:[#allocation10 + $0x10] sm:$0xff] }
 0x737   :  { %v576_v61 = vsel %vm575_vm12, %v1233_v50, %v572_v59  ;;  %v830_v59 = vld [vmem:[#allocation10 + $0x18] sm:$0xff] }
 0x738   :  { %1174 = vmatmul.msk.bf16.vlgmr.msra.gmra.mxu2 %vm206_vm2, %v1808_v60  ;;  %v578_v62 = vmul.f32 %v576_v61, %v1794_v10  ;;  %v832_v61 = vpack.c.bf16 %v830_v59, %v829_v19 }
 0x73a   :  { %580 = vst.msk [vmem:[%s1913_s18 + $0x8] sm:$0xff] %vm548_vm10, %v578_v62  ;;  %v656_v63 = vpack.c.bf16 %v578_v62, %v578_v62 }
 0x73c   :  { %v680_v1 = vsel %vm210_vm1, %v656_v63, 0 }
 0x73d   :  { %689 = vmatpush.bf16.msrb.mxu0 %v680_v1 }
 0x740   :  { %1175 = vmatmul.msk.bf16.vlgmr.msrb.gmra.mxu0 %vm206_vm2, %v1819_v2 }
 0x741   :  { %842 = vmatpush.bf16.msra.mxu0 %v832_v61 }
 0x7bb   :  { %v672_v6 = vpop.f32.mrf.mxu2 }
 0x7bd   :  { %v691_v7 = vpop.f32.mrf.mxu0 }
 0x7be   :  { %v695_v10 = vpack.c.bf16 %v691_v7, %v672_v6 }
 0x7c0   :  { %1176 = vmatmul.msk.bf16.vlgmr.msrb.gmra.mxu1 %vm548_vm10, %v695_v10 }
 0x7c3   :  { %v674_v4 = vpop.f32.mrf.mxu2 }
 0x7c5   :  { %v693_v11 = vpop.f32.mrf.mxu0 }
 0x83d   :  { %v714_v13 = vpop.f32.mrf.mxu1 }
 0x83e   :  { %v723_v14 = vadd.f32 %v1203_v12, %v714_v13 }
 0x840   :  { %v725_v15 = vmul.f32 %v723_v14, %v723_v14 }
 0x842   :  { %v727_v16 = vsel %vm253_vm3, %v725_v15, 0.0  ;;  %v827_v15 = vld [vmem:[#allocation10] sm:$0xff] }
 0x843   :  { %728 = vadd.xlane.f32.xlu2 %v727_v16  ;;  %v828_v16 = vld [vmem:[#allocation10 + $0x8] sm:$0xff] }
 0x845   :  { %v716_v17 = vpop.f32.mrf.mxu1 }
 0x846   :  { %v724_v20 = vadd.f32 %v1203_v12, %v716_v17  ;;  %v831_v17 = vpack.c.bf16 %v828_v16, %v827_v15 }
 0x848   :  { %v726_v21 = vmul.f32 %v724_v20, %v724_v20  ;;  %843 = vmatpush.bf16.msra.mxu0 %v831_v17 }
 0x84a   :  { %v730_v22 = vsel %vm253_vm3, %v726_v21, 0.0 }
 0x84b   :  { %731 = vadd.xlane.f32.xlu0 %v730_v22 }
 0x8b6   :  { %v729_v23 = vpop.xlane.xlu2 %728 }
 0x8b7   :  { %v733_v24 = vmax.f32 %v729_v23, 1e-24 }
 0x8b9   :  { %1234 = vrsqrt.f32 %v733_v24  ;;  %vm741_vm14 = vweird.f32 %v733_v24 }
 0x8be   :  { %v732_v25 = vpop.xlane.xlu0 %731 }
 0x8bf   :  { %v1235_v26 = vpop.eup %1234  ;;  %v734_v27 = vmax.f32 %v732_v25, 1e-24  ;;  %v1204_v25 = vld [vmem:[%s1906_s11] ss:$0 sm:$0xff] }
 0x8c0   :  { %v736_v28 = vmul.f32 %v1235_v26, %v733_v24  ;;  %vm742_vm10 = vweird.f32 %v1235_v26 }
 0x8c1   :  { %1236 = vrsqrt.f32 %v734_v27  ;;  %vm743_vm15 = vmor %vm741_vm14, %vm742_vm10  ;;  %vm751_vm4 = vweird.f32 %v734_v27 }
 0x8c2   :  { %v737_v29 = vmul.f32 %v1235_v26, %v736_v28 }
 0x8c4   :  { %v738_v30 = vmul.f32 0.5, %v737_v29 }
 0x8c6   :  { %v739_v31 = vsub.f32 1.5, %v738_v30 }
 0x8c7   :  { %v1237_v32 = vpop.eup %1236 }
 0x8c8   :  { %v746_v33 = vmul.f32 %v1237_v32, %v734_v27  ;;  %v740_v34 = vmul.f32 %v1235_v26, %v739_v31  ;;  %vm752_vm0 = vweird.f32 %v1237_v32 }
 0x8c9   :  { %vm753_vm5 = vmor %vm751_vm4, %vm752_vm0 }
 0x8ca   :  { %v747_v35 = vmul.f32 %v1237_v32, %v746_v33  ;;  %v744_v36 = vsel %vm743_vm15, %v1235_v26, %v740_v34 }
 0x8cb   :  { %v755_v37 = vmul.f32 %v744_v36, %v723_v14 }
 0x8cc   :  { %v748_v38 = vmul.f32 0.5, %v747_v35 }
 0x8cd   :  { %v757_v39 = vmax.f32 %v755_v37, 0.0 }
 0x8ce   :  { %v749_v40 = vsub.f32 1.5, %v748_v38 }
 0x8cf   :  { %v759_v41 = vsel %vm253_vm3, %v757_v39, 0.0 }
 0x8d0   :  { %760 = vadd.xlane.f32.xlu1 %v759_v41  ;;  %v750_v42 = vmul.f32 %v1237_v32, %v749_v40 }
 0x8d2   :  { %v754_v43 = vsel %vm753_vm5, %v1237_v32, %v750_v42 }
 0x8d3   :  { %v756_v44 = vmul.f32 %v754_v43, %v724_v20 }
 0x8d5   :  { %v758_v45 = vmax.f32 %v756_v44, 0.0 }
 0x8d7   :  { %v762_v46 = vsel %vm253_vm3, %v758_v45, 0.0 }
 0x8d8   :  { %763 = vadd.xlane.f32.xlu2 %v762_v46 }
 0x943   :  { %v761_v47 = vpop.xlane.xlu1 %760 }
 0x94b   :  { %v764_v48 = vpop.xlane.xlu2 %763 }
 0x94c   :  { %v765_v49 = vadd.f32 %v764_v48, %v761_v47 }
 0x94e   :  { %v766_v50 = vmul.f32 %v765_v49, %v1738_v5 }
 0x950   :  { %v768_v51 = vsub.f32 %v758_v45, %v766_v50  ;;  %v767_v52 = vsub.f32 %v757_v39, %v766_v50 }
 0x952   :  { %v770_v53 = vmul.f32 %v768_v51, %v768_v51  ;;  %v769_v54 = vmul.f32 %v767_v52, %v767_v52 }
 0x954   :  { %v774_v55 = vsel %vm253_vm3, %v770_v53, 0.0  ;;  %v771_v56 = vsel %vm253_vm3, %v769_v54, 0.0 }
 0x955   :  { %775 = vadd.xlane.f32.xlu1 %v774_v55  ;;  %772 = vadd.xlane.f32.xlu0 %v771_v56 }
 0x9c8   :  { %v776_v57 = vpop.xlane.xlu1 %775  ;;  %v773_v58 = vpop.xlane.xlu0 %772 }
 0x9c9   :  { %v777_v18 = vadd.f32 %v776_v57, %v773_v58 }
 0x9cb   :  { %v778_v62 = vmul.f32 %v777_v18, %v1738_v5 }
 0x9cd   :  { %v779_v63 = vadd.f32 1e-05, %v778_v62 }
 0x9cf   :  { %1238 = vrsqrt.f32 %v779_v63  ;;  %vm786_vm7 = vweird.f32 %v779_v63 }
 0x9d5   :  { %v1239_v0 = vpop.eup %1238 }
 0x9d6   :  { %v781_v1 = vmul.f32 %v1239_v0, %v779_v63  ;;  %vm787_vm6 = vweird.f32 %v1239_v0 }
 0x9d7   :  { %vm788_vm8 = vmor %vm786_vm7, %vm787_vm6 }
 0x9d8   :  { %v782_v3 = vmul.f32 %v1239_v0, %v781_v1 }
 0x9da   :  { %v783_v8 = vmul.f32 0.5, %v782_v3 }
 0x9dc   :  { %v784_v9 = vsub.f32 1.5, %v783_v8 }
 0x9de   :  { %v785_v6 = vmul.f32 %v1239_v0, %v784_v9 }
 0x9e0   :  { %v789_v7 = vsel %vm788_vm8, %v1239_v0, %v785_v6 }
 0x9e1   :  { %v790_v10 = vmul.f32 %v789_v7, %v767_v52  ;;  %v791_v4 = vmul.f32 %v789_v7, %v768_v51 }
 0x9e3   :  { %v792_v11 = vpack.c.bf16 %v790_v10, %v790_v10  ;;  %v793_v12 = vpack.c.bf16 %v791_v4, %v791_v4 }
 0x9e5   :  { %v795_v13 = vsel %vm210_vm1, %v792_v11, 0  ;;  %v811_v14 = vsel %vm210_vm1, %v793_v12, 0 }
 0x9e6   :  { %804 = vmatpush.bf16.msrb.mxu3 %v795_v13  ;;  %820 = vmatpush.bf16.msrb.mxu2 %v811_v14 }
 0x9e9   :  { %1177 = vmatmul.msk.bf16.vlgmr.msrb.gmra.mxu3 %vm206_vm2, %v1808_v60  ;;  %1178 = vmatmul.msk.bf16.vlgmr.msrb.gmra.mxu2 %vm206_vm2, %v1819_v2 }
 0xa6c   :  { %v806_v20 = vpop.f32.mrf.mxu3  ;;  %v822_v21 = vpop.f32.mrf.mxu2 }
 0xa6d   :  { %v826_v22 = vpack.c.bf16 %v822_v21, %v806_v20 }
 0xa6f   :  { %1179 = vmatmul.msk.bf16.vlgmr.msra.gmra.mxu0 %vm253_vm3, %v826_v22 }
 0xa74   :  { %v808_v23 = vpop.f32.mrf.mxu3  ;;  %v824_v24 = vpop.f32.mrf.mxu2 }
 0xa75   :  { %v960_v24 = vld [vmem:[#allocation11 + $0x10] sm:$0xff] }
 0xaec   :  { %v845_v26 = vpop.f32.mrf.mxu0 }
 0xaed   :  { %v854_v27 = vadd.f32 %v1204_v25, %v845_v26 }
 0xaef   :  { %v856_v28 = vmul.f32 %v854_v27, %v854_v27 }
 0xaf1   :  { %v858_v29 = vsel %vm253_vm3, %v856_v28, 0.0  ;;  %v959_v28 = vld [vmem:[#allocation11 + $0x8] sm:$0xff] }
 0xaf2   :  { %859 = vadd.xlane.f32.xlu2 %v858_v29 }
 0xaf4   :  { %v847_v30 = vpop.f32.mrf.mxu0 }
 0xaf5   :  { %v855_v31 = vadd.f32 %v1204_v25, %v847_v30  ;;  %v961_v25 = vld [vmem:[#allocation11 + $0x18] sm:$0xff] }
 0xaf6   :  { %v963_v26 = vpack.c.bf16 %v961_v25, %v960_v24 }
 0xaf7   :  { %v857_v32 = vmul.f32 %v855_v31, %v855_v31 }
 0xaf8   :  { %973 = vmatpush.bf16.msra.mxu2 %v963_v26  ;;  %v1074_v26 = vld [vmem:[#allocation14 + $0x10] sm:$0xff] }
 0xaf9   :  { %v861_v33 = vsel %vm253_vm3, %v857_v32, 0.0 }
 0xafa   :  { %862 = vadd.xlane.f32.xlu0 %v861_v33 }
 0xb65   :  { %v860_v34 = vpop.xlane.xlu2 %859 }
 0xb66   :  { %v864_v35 = vmax.f32 %v860_v34, 1e-24 }
 0xb68   :  { %1240 = vrsqrt.f32 %v864_v35  ;;  %vm872_vm11 = vweird.f32 %v864_v35 }
 0xb6d   :  { %v863_v36 = vpop.xlane.xlu0 %862 }
 0xb6e   :  { %v1241_v37 = vpop.eup %1240  ;;  %v865_v38 = vmax.f32 %v863_v36, 1e-24 }
 0xb6f   :  { %v867_v39 = vmul.f32 %v1241_v37, %v864_v35  ;;  %vm873_vm9 = vweird.f32 %v1241_v37 }
 0xb70   :  { %1242 = vrsqrt.f32 %v865_v38  ;;  %vm874_vm12 = vmor %vm872_vm11, %vm873_vm9  ;;  %vm882_vm10 = vweird.f32 %v865_v38  ;;  %vm1051_vm9 = vcmask 1041409  }
 0xb71   :  { %v868_v40 = vmul.f32 %v1241_v37, %v867_v39 }
 0xb73   :  { %v869_v41 = vmul.f32 0.5, %v868_v40 }
 0xb75   :  { %v870_v42 = vsub.f32 1.5, %v869_v41 }
 0xb76   :  { %v1243_v43 = vpop.eup %1242 }
 0xb77   :  { %v877_v44 = vmul.f32 %v1243_v43, %v865_v38  ;;  %v871_v45 = vmul.f32 %v1241_v37, %v870_v42  ;;  %vm883_vm13 = vweird.f32 %v1243_v43 }
 0xb78   :  { %vm884_vm14 = vmor %vm882_vm10, %vm883_vm13 }
 0xb79   :  { %v878_v46 = vmul.f32 %v1243_v43, %v877_v44  ;;  %v875_v47 = vsel %vm874_vm12, %v1241_v37, %v871_v45 }
 0xb7a   :  { %v886_v48 = vmul.f32 %v875_v47, %v854_v27  ;;  %v958_v27 = vld [vmem:[#allocation11] sm:$0xff]  ;;  %v1039_v47 = vld [vmem:[#allocation13 + $0x10] sm:$0xff] }
 0xb7b   :  { %v879_v49 = vmul.f32 0.5, %v878_v46  ;;  %v962_v29 = vpack.c.bf16 %v959_v28, %v958_v27  ;;  %v1075_v27 = vld [vmem:[#allocation14 + $0x18] sm:$0xff] }
 0xb7c   :  { %v888_v50 = vmax.f32 %v886_v48, 0.0  ;;  %v1040_v48 = vld [vmem:[#allocation13 + $0x18] sm:$0xff]  ;;  %v1077_v28 = vpack.c.bf16 %v1075_v27, %v1074_v26 }
 0xb7d   :  { %v880_v51 = vsub.f32 1.5, %v879_v49  ;;  %974 = vmatpush.bf16.msra.mxu2 %v962_v29  ;;  %v1072_v29 = vld [vmem:[#allocation14] sm:$0xff] }
 0xb7e   :  { %v890_v52 = vsel %vm253_vm3, %v888_v50, 0.0 }
 0xb7f   :  { %891 = vadd.xlane.f32.xlu1 %v890_v52  ;;  %v881_v53 = vmul.f32 %v1243_v43, %v880_v51  ;;  %v1037_v52 = vld [vmem:[#allocation13] sm:$0xff] }
 0xb81   :  { %v885_v54 = vsel %vm884_vm14, %v1243_v43, %v881_v53  ;;  %v1038_v53 = vld [vmem:[#allocation13 + $0x8] sm:$0xff] }
 0xb82   :  { %v887_v55 = vmul.f32 %v885_v54, %v855_v31 }
 0xb84   :  { %v889_v56 = vmax.f32 %v887_v55, 0.0  ;;  %v1041_v55 = vpack.c.bf16 %v1038_v53, %v1037_v52 }
 0xb86   :  { %v893_v57 = vsel %vm253_vm3, %v889_v56, 0.0 }
 0xb87   :  { %894 = vadd.xlane.f32.xlu2 %v893_v57 }
 0xbf2   :  { %v892_v58 = vpop.xlane.xlu1 %891 }
 0xbfa   :  { %v895_v18 = vpop.xlane.xlu2 %894 }
 0xbfb   :  { %v896_v19 = vadd.f32 %v895_v18, %v892_v58 }
 0xbfd   :  { %v897_v59 = vmul.f32 %v896_v19, %v1738_v5 }
 0xbff   :  { %v899_v61 = vsub.f32 %v889_v56, %v897_v59  ;;  %v898_v62 = vsub.f32 %v888_v50, %v897_v59  ;;  %v1042_v50 = vpack.c.bf16 %v1040_v48, %v1039_v47 }
 0xc01   :  { %v901_v63 = vmul.f32 %v899_v61, %v899_v61  ;;  %v900_v0 = vmul.f32 %v898_v62, %v898_v62  ;;  %1063 = vmatpush.bf16.msrb.mxu0 %v1042_v50 }
 0xc03   :  { %v905_v1 = vsel %vm253_vm3, %v901_v63, 0.0  ;;  %v902_v3 = vsel %vm253_vm3, %v900_v0, 0.0 }
 0xc04   :  { %906 = vadd.xlane.f32.xlu1 %v905_v1  ;;  %903 = vadd.xlane.f32.xlu0 %v902_v3 }
 0xc05   :  { %1064 = vmatpush.bf16.msrb.mxu0 %v1041_v55 }
 0xc77   :  { %v907_v8 = vpop.xlane.xlu1 %906  ;;  %v904_v9 = vpop.xlane.xlu0 %903 }
 0xc78   :  { %v908_v6 = vadd.f32 %v907_v8, %v904_v9 }
 0xc7a   :  { %v909_v7 = vmul.f32 %v908_v6, %v1738_v5 }
 0xc7c   :  { %v910_v10 = vadd.f32 1e-05, %v909_v7 }
 0xc7e   :  { %1244 = vrsqrt.f32 %v910_v10  ;;  %vm917_vm0 = vweird.f32 %v910_v10 }
 0xc84   :  { %v1245_v4 = vpop.eup %1244 }
 0xc85   :  { %v912_v11 = vmul.f32 %v1245_v4, %v910_v10  ;;  %vm918_vm15 = vweird.f32 %v1245_v4 }
 0xc86   :  { %vm919_vm4 = vmor %vm917_vm0, %vm918_vm15 }
 0xc87   :  { %v913_v12 = vmul.f32 %v1245_v4, %v912_v11 }
 0xc89   :  { %v914_v13 = vmul.f32 0.5, %v913_v12 }
 0xc8b   :  { %v915_v14 = vsub.f32 1.5, %v914_v13 }
 0xc8d   :  { %v916_v15 = vmul.f32 %v1245_v4, %v915_v14 }
 0xc8f   :  { %v920_v16 = vsel %vm919_vm4, %v1245_v4, %v916_v15 }
 0xc90   :  { %v921_v17 = vmul.f32 %v920_v16, %v898_v62  ;;  %v922_v20 = vmul.f32 %v920_v16, %v899_v61 }
 0xc92   :  { %v923_v21 = vpack.c.bf16 %v921_v17, %v921_v17  ;;  %v924_v22 = vpack.c.bf16 %v922_v20, %v922_v20 }
 0xc94   :  { %v926_v23 = vsel %vm210_vm1, %v923_v21, 0  ;;  %v942_v5 = vsel %vm210_vm1, %v924_v22, 0 }
 0xc95   :  { %935 = vmatpush.bf16.msra.mxu1 %v926_v23  ;;  %951 = vmatpush.bf16.msra.mxu3 %v942_v5 }
 0xc98   :  { %1180 = vmatmul.msk.bf16.vlgmr.msra.gmra.mxu1 %vm206_vm2, %v1808_v60  ;;  %1181 = vmatmul.msk.bf16.vlgmr.msra.gmra.mxu3 %vm206_vm2, %v1819_v2  ;;  %v1205_v60 = vld [vmem:[%s1908_s13] ss:$0 sm:$0xff] }
 0xc99   :  { %1091 = vmatpush.bf16.msrb.mxu1 %v1077_v28 }
 0xd15   :  { %v937_v30 = vpop.f32.mrf.mxu1 }
 0xd1b   :  { %v953_v31 = vpop.f32.mrf.mxu3 }
 0xd1c   :  { %v957_v32 = vpack.c.bf16 %v953_v31, %v937_v30  ;;  %v1073_v30 = vld [vmem:[#allocation14 + $0x8] sm:$0xff] }
 0xd1d   :  { %v939_v33 = vpop.f32.mrf.mxu1  ;;  %v1076_v31 = vpack.c.bf16 %v1073_v30, %v1072_v29 }
 0xd1e   :  { %1182 = vmatmul.msk.bf16.vlgmr.msra.gmra.mxu2 %vm253_vm3, %v957_v32  ;;  %v1206_v32 = vld [vmem:[%s1910_s15] ss:$0 sm:$0xff] }
 0xd1f   :  { %1092 = vmatpush.bf16.msrb.mxu1 %v1076_v31 }
 0xd23   :  { %v955_v34 = vpop.f32.mrf.mxu3 }
 0xda1   :  { %v976_v2 = vpop.f32.mrf.mxu2 }
 0xda2   :  { %v985_v35 = vadd.f32 %v1205_v60, %v976_v2 }
 0xda4   :  { %v987_v36 = vmul.f32 %v985_v35, %v985_v35 }
 0xda6   :  { %v989_v37 = vsel %vm253_vm3, %v987_v36, 0.0  ;;  %v1207_v36 = vld [vmem:[%s1912_s17] ss:$0 sm:$0xff] }
 0xda7   :  { %990 = vadd.xlane.f32.xlu2 %v989_v37 }
 0xda9   :  { %v978_v38 = vpop.f32.mrf.mxu2 }
 0xdaa   :  { %v986_v39 = vadd.f32 %v1205_v60, %v978_v38 }
 0xdac   :  { %v988_v40 = vmul.f32 %v986_v39, %v986_v39 }
 0xdae   :  { %v992_v41 = vsel %vm253_vm3, %v988_v40, 0.0 }
 0xdaf   :  { %993 = vadd.xlane.f32.xlu0 %v992_v41 }
 0xe1a   :  { %v991_v42 = vpop.xlane.xlu2 %990 }
 0xe1b   :  { %v995_v43 = vmax.f32 %v991_v42, 1e-24 }
 0xe1d   :  { %1246 = vrsqrt.f32 %v995_v43  ;;  %vm1003_vm2 = vweird.f32 %v995_v43 }
 0xe22   :  { %v994_v44 = vpop.xlane.xlu0 %993 }
 0xe23   :  { %v1247_v45 = vpop.eup %1246  ;;  %v996_v46 = vmax.f32 %v994_v44, 1e-24 }
 0xe24   :  { %v998_v49 = vmul.f32 %v1247_v45, %v995_v43  ;;  %vm1004_vm1 = vweird.f32 %v1247_v45 }
 0xe25   :  { %1248 = vrsqrt.f32 %v996_v46  ;;  %vm1005_vm5 = vmor %vm1003_vm2, %vm1004_vm1  ;;  %vm1013_vm7 = vweird.f32 %v996_v46 }
 0xe26   :  { %v999_v51 = vmul.f32 %v1247_v45, %v998_v49 }
 0xe28   :  { %v1000_v54 = vmul.f32 0.5, %v999_v51 }
 0xe2a   :  { %v1001_v56 = vsub.f32 1.5, %v1000_v54 }
 0xe2b   :  { %v1249_v57 = vpop.eup %1248 }
 0xe2c   :  { %v1002_v58 = vmul.f32 %v1247_v45, %v1001_v56  ;;  %v1008_v18 = vmul.f32 %v1249_v57, %v996_v46  ;;  %vm1014_vm6 = vweird.f32 %v1249_v57 }
 0xe2d   :  { %vm1015_vm8 = vmor %vm1013_vm7, %vm1014_vm6 }
 0xe2e   :  { %v1006_v19 = vsel %vm1005_vm5, %v1247_v45, %v1002_v58  ;;  %v1009_v59 = vmul.f32 %v1249_v57, %v1008_v18 }
 0xe2f   :  { %v1017_v61 = vmul.f32 %v1006_v19, %v985_v35 }
 0xe30   :  { %v1010_v62 = vmul.f32 0.5, %v1009_v59 }
 0xe31   :  { %v1021_v63 = vsel %vm253_vm3, %v1017_v61, -inf  ;;  %1019 = vst.msk [vmem:[#allocation17] sm:$0xff] %vm253_vm3, %v1017_v61 }
 0xe32   :  { %v1022_v0 = vrot.slane %v1021_v63, 4  ;;  %v1011_v1 = vsub.f32 1.5, %v1010_v62 }
 0xe34   :  { %v1023_v3 = vmax.f32 %v1021_v63, %v1022_v0  ;;  %v1012_v8 = vmul.f32 %v1249_v57, %v1011_v1 }
 0xe36   :  { %v1024_v9 = vrot.slane %v1023_v3, 2  ;;  %v1016_v6 = vsel %vm1015_vm8, %v1249_v57, %v1012_v8 }
 0xe37   :  { %v1018_v7 = vmul.f32 %v1016_v6, %v986_v39 }
 0xe38   :  { %v1025_v10 = vmax.f32 %v1023_v3, %v1024_v9 }
 0xe39   :  { %v1028_v4 = vsel %vm253_vm3, %v1018_v7, -inf  ;;  %1020 = vst.msk [vmem:[#allocation17 + $0x8] sm:$0xff] %vm253_vm3, %v1018_v7 }
 0xe3a   :  { %v1029_v11 = vrot.slane %v1028_v4, 4  ;;  %v1026_v12 = vrot.slane %v1025_v10, 1  ;;  %1127 = dma.vmem_to_hbm [thread:$0]  %s1120_s0, 256, %s1122_s12, [#allocation18], %s1529_s5, %s1529_s5, %s1530_s22  }
 0xe3c   :  { %v1030_v13 = vmax.f32 %v1028_v4, %v1029_v11  ;;  %v1027_v15 = vmax.f32 %v1025_v10, %v1026_v12 }
 0xe3e   :  { %v1031_v14 = vrot.slane %v1030_v13, 2  ;;  %v1035_v20 = vpack.c.bf16 %v1027_v15, %v1027_v15 }
 0xe40   :  { %v1032_v16 = vmax.f32 %v1030_v13, %v1031_v14  ;;  %v1049_v23 = vunpack.c.l.b16 %v1035_v20 }
 0xe42   :  { %v1033_v17 = vrot.slane %v1032_v16, 1 }
 0xe44   :  { %v1034_v21 = vmax.f32 %v1032_v16, %v1033_v17 }
 0xe46   :  { %v1036_v22 = vpack.c.bf16 %v1034_v21, %v1034_v21 }
 0xe48   :  { %v1050_v5 = vunpack.c.l.b16 %v1036_v22 }
 0xe4a   :  { %v1052_v24 = vsel %vm1051_vm9, %v1050_v5, %v1049_v23 }
 0xe4b   :  { %v1053_v25 = vpack.c.b16 %v1052_v24, %v1052_v24 }
 0xe4d   :  { %1183 = vmatmul.msk.bf16.vlgmr.msrb.gmra.mxu0 %vm253_vm3, %v1053_v25 }
 0xeca   :  { %v1066_v33 = vpop.f32.mrf.mxu0 }
 0xecb   :  { %v1067_v34 = vadd.f32 %v1206_v32, %v1066_v33 }
 0xecd   :  { %v1070_v60 = vmax.f32 %v1067_v34, 0.0 }
 0xecf   :  { %v1071_v2 = vpack.c.bf16 %v1070_v60, %v1070_v60 }
 0xed1   :  { %1184 = vmatmul.msk.bf16.vlgmr.msrb.gmra.mxu1 %vm253_vm3, %v1071_v2  ;;  %vm1098_vm3 = vcmask 254976  }
 0xed2   :  { %v1068_v35 = vpop.f32.mrf.mxu0 }
 0xf4e   :  { %v1094_v37 = vpop.f32.mrf.mxu1 }
 0xf4f   :  { %v1095_v38 = vadd.f32 %v1207_v36, %v1094_v37 }
 0xf51   :  { %1099 = vst.msk [vmem:[#allocation19] sm:$0x3] %vm1098_vm3, %v1095_v38 }
 0xf52   :  { %1138 = dma.vmem_to_hbm [thread:$0]  %s1134_s7, 32, %s1136_s21, [#allocation18]  }
 0xf56   :  { %v1096_v39 = vpop.f32.mrf.mxu1 }
 0xf57   :  { %1524 = dma.done.wait [#allocation4], 256  }
 0xf58   :  { %1525 = vsyncadd [#allocation4], 4294967040 }
 0xf59   :  { %1526 = dma.done.wait [#allocation18], 288  }
 0xf5a   :  { %1527 = vsyncadd [#allocation18], 4294967008 }
 0xf5b   :  { %1153 = vsyncpa [#allocation3], 1 }
 0xf5c   :  { %1154 = vsyncpa [#allocation6], 1 }
 0xf5d   :  { %1155 = vsyncpa [#allocation9], 1 }
 0xf5e   :  { %1156 = vsyncpa [#allocation12], 1 }
 0xf5f   :  { %1157 = vsyncpa [#allocation15], 1 }
 0xf60   :  { %1158 = vsyncpa [#allocation4], 1 }
 0xf61   :  { %1159 = vsyncpa [#allocation18], 1 }

</bundles_post_ra>
